<compile_context>
chip_gen: v6e
topology: v6e:2x2x1
jax: 0.10.0
libtpu: 0.0.40
codegen_flags: <defaults>
</compile_context>

<pallas_src>
import functools

import jax
import jax.numpy as jnp
from jax.experimental import pallas as pl
from jax.experimental.pallas import tpu as pltpu


def _bottleneck_kernel(x_ref, wa_ref, w2_ref, w3_ref, b1_ref, b2_ref, bo_ref,
                       out_ref, *, nb, L, Pp, use_roll):
    x = x_ref[...]                                      # (MB, Cinp) bf16, MB = nb*L
    MB = x.shape[0]

    # Fused conv1 (1x1) + shortcut projection (1x1): one MXU pass over x.
    h = jnp.dot(x, wa_ref[...], preferred_element_type=jnp.float32)   # (MB, Pp+Coutp)
    h1 = jnp.maximum(h[:, :Pp] + b1_ref[...], 0.0)      # conv1 -> bn1 -> relu  (f32)
    sc = h[:, Pp:]                                      # shortcut conv -> bn (bias fused below)

    # Per-sample circular neighbours along L: view the slab as (nb, L, Pp) and
    # rotate each sample on the sublane axis (XLU).  L % 8 == 0 keeps the reshapes
    # vreg-aligned (free) in f32.
    h1_3d = h1.reshape(nb, L, Pp)
    if use_roll:
        h_m1 = pltpu.roll(h1_3d, shift=1, axis=1)       # row l-1 (circular)
        h_p1 = pltpu.roll(h1_3d, shift=L - 1, axis=1)   # row l+1 (circular)
    else:                                               # fallback: static slice + concat
        h_m1 = jnp.concatenate([h1_3d[:, L - 1:, :], h1_3d[:, :L - 1, :]], axis=1)
        h_p1 = jnp.concatenate([h1_3d[:, 1:, :], h1_3d[:, :1, :]], axis=1)
    h_m1 = h_m1.reshape(MB, Pp)
    h_p1 = h_p1.reshape(MB, Pp)

    # conv2 (k=3, circular) as three accumulating MXU passes (no (MB, 3Pp) concat).
    h2 = jnp.dot(h_m1.astype(jnp.bfloat16), w2_ref[0],
                 preferred_element_type=jnp.float32)
    h2 += jnp.dot(h1.astype(jnp.bfloat16), w2_ref[1],
                  preferred_element_type=jnp.float32)
    h2 += jnp.dot(h_p1.astype(jnp.bfloat16), w2_ref[2],
                  preferred_element_type=jnp.float32)
    h2 = jnp.maximum(h2 + b2_ref[...], 0.0)             # bn2 -> relu (f32)

    # conv3 (1x1) -> bn3, residual add (bn3 bias + shortcut bias pre-fused), relu.
    h3 = jnp.dot(h2.astype(jnp.bfloat16), w3_ref[...],
                 preferred_element_type=jnp.float32)     # (MB, Coutp)
    out_ref[...] = jnp.maximum(h3 + sc + bo_ref[...], 0.0).astype(out_ref.dtype)


def _rup(x, m):
    return ((x + m - 1) // m) * m


def _pad_to(a, shape):
    return jnp.pad(a, tuple((0, s - d) for s, d in zip(shape, a.shape)))


def _pick_nb(N, L, Cinp, Pp, Coutp, vmem_bytes):
    """Samples per grid step, sized against the VMEM budget (generation-aware)."""
    per_row = (2 * Cinp * 2          # x slab  (bf16, double-buffered)
               + 2 * Coutp * 2       # out slab (bf16, double-buffered)
               + (Pp + Coutp) * 4    # h (f32)
               + 4 * Pp * 4          # h1 + two rolled taps + h2 (f32)
               + 3 * Pp * 2          # bf16 tap copies fed to the MXU
               + Coutp * 4)          # h3 (f32)
    const_bytes = (Cinp * (Pp + Coutp) + 3 * Pp * Pp + Pp * Coutp) * 2 \
                  + (2 * Pp + Coutp) * 4
    budget = int(0.6 * vmem_bytes) - 2 * const_bytes
    max_rows = max(L, budget // per_row)
    # Smaller target on 64 MiB VMEM parts (v7x); larger where VMEM allows (v5e/v6e).
    target_rows = 1024 if vmem_bytes <= 64 * 1024 * 1024 else 2048
    rows = max(L, min(max_rows, target_rows))
    nb = max(1, min(N, rows // L))
    # Prefer >=2 grid steps so ("parallel",) can feed both TensorCores on v7x,
    # as long as each step still has a healthy row count.
    if nb >= N and N > 1 and ((N + 1) // 2) * L >= 512:
        nb = (N + 1) // 2
    return nb


def bottleneck_block(x_nlc, w1, w2, w3, wsc, s1, b1, s2, b2, s3, b3, ssc, bsc, *, nb=None):
    """x_nlc: (N, L, Cin).  Weights in kernel layout (see __main__).  Returns (N, L, Cout) bf16."""
    N, L, Cin = x_nlc.shape
    P = w1.shape[1]
    Cout = w3.shape[1]
    assert L % 8 == 0, "L must be sublane-aligned (multiple of 8)"

    Cinp, Pp, Coutp = _rup(Cin, 128), _rup(P, 128), _rup(Cout, 128)

    try:
        vmem_bytes = int(pltpu.get_tpu_info().vmem_capacity_bytes)
    except Exception:
        vmem_bytes = 64 * 1024 * 1024
    if nb is None:
        nb = _pick_nb(N, L, Cinp, Pp, Coutp, vmem_bytes)

    num_blocks = -(-N // nb)          # pad N up instead of shrinking nb for awkward N
    N_pad = num_blocks * nb
    MB = nb * L

    # ---- Fold BN scales into weights; fuse conv1 | shortcut; per-tap conv2 weights ----
    wa = jnp.zeros((Cinp, Pp + Coutp), jnp.float32)
    wa = wa.at[:Cin, :P].set(w1 * s1)                    # conv1 * bn1_scale
    wa = wa.at[:Cin, Pp:Pp + Cout].set(wsc * ssc)        # shortcut conv * bn_sc_scale
    wa = wa.astype(jnp.bfloat16)

    w2s = jnp.zeros((3, Pp, Pp), jnp.float32)
    w2s = w2s.at[:, :P, :P].set(w2 * s2)                 # tap order: l-1, l, l+1
    w2s = w2s.astype(jnp.bfloat16)

    w3s = _pad_to(w3 * s3, (Pp, Coutp)).astype(jnp.bfloat16)

    b1p = _pad_to(b1, (1, Pp))                           # f32 biases (padded lanes = 0)
    b2p = _pad_to(b2, (1, Pp))
    bop = _pad_to(b3 + bsc, (1, Coutp))                  # fused residual bias

    # ---- Flatten (N, L) -> M rows; pad only when needed; cast to bf16 ----
    x_bf = x_nlc.astype(jnp.bfloat16)
    if N_pad != N or Cinp != Cin:
        x_bf = jnp.pad(x_bf, ((0, N_pad - N), (0, 0), (0, Cinp - Cin)))
    x_flat = x_bf.reshape(N_pad * L, Cinp)

    vmem_limit = max(32 * 1024 * 1024,
                     min(int(0.7 * vmem_bytes), 100 * 1024 * 1024))

    def _run(use_roll, single_buffer_consts):
        def cspec(shape):
            idx = (lambda m: (0, 0)) if len(shape) == 2 else (lambda m: (0, 0, 0))
            if single_buffer_consts:
                return pl.BlockSpec(shape, idx, pipeline_mode=pl.Buffered(1))
            return pl.BlockSpec(shape, idx)

        kernel = functools.partial(_bottleneck_kernel, nb=nb, L=L, Pp=Pp,
                                   use_roll=use_roll)
        return pl.pallas_call(
            kernel,
            out_shape=jax.ShapeDtypeStruct((N_pad * L, Coutp), jnp.bfloat16),
            grid_spec=pltpu.PrefetchScalarGridSpec(
                num_scalar_prefetch=0,
                grid=(num_blocks,),
                in_specs=[
                    pl.BlockSpec((MB, Cinp), lambda m: (m, 0)),     # x slab (streamed)
                    cspec((Cinp, Pp + Coutp)),                      # [w1*s1 | wsc*ssc]
                    cspec((3, Pp, Pp)),                             # per-tap conv2 weights
                    cspec((Pp, Coutp)),                             # w3*s3
                    cspec((1, Pp)),                                 # b1
                    cspec((1, Pp)),                                 # b2
                    cspec((1, Coutp)),                              # b3 + bsc
                ],
                out_specs=pl.BlockSpec((MB, Coutp), lambda m: (m, 0)),
            ),
            compiler_params=pltpu.CompilerParams(
                dimension_semantics=("parallel",),   # feeds both TCs on v7x when grid > 1
                vmem_limit_bytes=vmem_limit,
            ),
        )(x_flat, wa, w2s, w3s, b1p, b2p, bop)

    # Preferred config first; degrade gracefully if an optional feature is rejected.
    configs = ((True, True), (True, False), (False, True), (False, False))
    out_flat = None
    last_err = None
    for use_roll, single_buf in configs:
        try:
            out_flat = _run(use_roll, single_buf)
            break
        except Exception as e:                # noqa: BLE001 - retry with safer config
            last_err = e
    if out_flat is None:
        raise last_err

    return out_flat.reshape(N_pad, L, Coutp)[:N, :, :Cout]


def _fold_bn(gamma, beta, mean, var, eps=1e-5):
    scale = gamma / jnp.sqrt(var + eps)
    bias = beta - mean * scale
    return scale[None, :], bias[None, :]


def _make_bn_params(key, c):
    k1, k2, k3, k4 = jax.random.split(key, 4)
    gamma = 1.0 + 0.1 * jax.random.normal(k1, (c,), jnp.float32)
    beta = 0.1 * jax.random.normal(k2, (c,), jnp.float32)
    mean = 0.1 * jax.random.normal(k3, (c,), jnp.float32)
    var = jax.random.uniform(k4, (c,), jnp.float32, 0.5, 1.5)
    return _fold_bn(gamma, beta, mean, var)


def _reference(x_nlc, w1, w2, w3, wsc, s1, b1, s2, b2, s3, b3, ssc, bsc):
    h1 = jnp.maximum(jnp.einsum('nlc,cp->nlp', x_nlc, w1) * s1 + b1, 0.0)
    h_m1 = jnp.roll(h1, 1, axis=1)
    h_p1 = jnp.roll(h1, -1, axis=1)
    h2 = (jnp.einsum('nlp,pq->nlq', h_m1, w2[0])
          + jnp.einsum('nlp,pq->nlq', h1, w2[1])
          + jnp.einsum('nlp,pq->nlq', h_p1, w2[2]))
    h2 = jnp.maximum(h2 * s2 + b2, 0.0)
    h3 = jnp.einsum('nlp,pq->nlq', h2, w3) * s3 + b3
    sc = jnp.einsum('nlc,cq->nlq', x_nlc, wsc) * ssc + bsc
    return jnp.maximum(h3 + sc, 0.0)


if __name__ == "__main__":
    key = jax.random.PRNGKey(0)
    N, Cin, L = 2, 8, 16         # PyTorch input: (N, Cin, L)
    P = 4                        # planes
    Cout = 4 * P                 # expansion * planes

    ks = jax.random.split(key, 10)
    # PyTorch input is NCL; transpose to NLC for the kernel.
    x_ncl = jax.random.normal(ks[0], (N, Cin, L), jnp.float32)
    x_nlc = jnp.transpose(x_ncl, (0, 2, 1))

    # Weights generated directly in kernel layout (synthetic, deterministic).
    # conv1:         PyTorch (P, Cin, 1)   -> (Cin, P)
    # conv2:         PyTorch (P, P, 3)     -> (3, P, P)   (tap k, in, out)
    # conv3:         PyTorch (4P, P, 1)    -> (P, 4P)
    # shortcut conv: PyTorch (4P, Cin, 1)  -> (Cin, 4P)
    w1 = 0.3 * jax.random.normal(ks[1], (Cin, P), jnp.float32)
    w2 = 0.3 * jax.random.normal(ks[2], (3, P, P), jnp.float32)
    w3 = 0.3 * jax.random.normal(ks[3], (P, Cout), jnp.float32)
    wsc = 0.3 * jax.random.normal(ks[4], (Cin, Cout), jnp.float32)

    s1, b1 = _make_bn_params(ks[5], P)
    s2, b2 = _make_bn_params(ks[6], P)
    s3, b3 = _make_bn_params(ks[7], Cout)
    ssc, bsc = _make_bn_params(ks[8], Cout)

    args = (x_nlc, w1, w2, w3, wsc, s1, b1, s2, b2, s3, b3, ssc, bsc)

    out_nlc = bottleneck_block(*args)
    out_nlc = jax.block_until_ready(out_nlc)
    out_ncl = jnp.transpose(out_nlc.astype(jnp.float32), (0, 2, 1))   # back to PyTorch NCL

    ref_ncl = jnp.transpose(_reference(*args), (0, 2, 1))
    assert out_ncl.shape == (N, Cout, L), out_ncl.shape
    # bf16 MXU inputs (f32 accumulation) + bf16 output vs. pure-f32 reference.
    assert jnp.allclose(out_ncl, ref_ncl, rtol=5e-2, atol=5e-2), \
        float(jnp.max(jnp.abs(out_ncl - ref_ncl)))

    print("KERNEL_OK")
</pallas_src>

<mosaic_0001>
module attributes {stable_mosaic.version = 11 : i64} {
  func.func @_bottleneck_kernel(%arg0: i32, %arg1: memref<32x128xbf16, #tpu.memory_space<vmem>>, %arg2: memref<128x256xbf16, #tpu.memory_space<vmem>>, %arg3: memref<3x128x128xbf16, #tpu.memory_space<vmem>>, %arg4: memref<128x128xbf16, #tpu.memory_space<vmem>>, %arg5: memref<1x128xf32, #tpu.memory_space<vmem>>, %arg6: memref<1x128xf32, #tpu.memory_space<vmem>>, %arg7: memref<1x128xf32, #tpu.memory_space<vmem>>, %arg8: memref<32x128xbf16, #tpu.memory_space<vmem>>) attributes {dimension_semantics = [#tpu.dimension_semantics<parallel>], iteration_bounds = array<i64: 1>, scalar_prefetch = 0 : i64, scratch_operands = 0 : i64, tpu.core_type = #tpu.core_type<tc>, window_params = [{transform_indices = @transform_0, window_bounds = array<i64: 32, 128>}, {pipeline_mode = #tpu.pipeline_mode<synchronous>, transform_indices = @transform_1, window_bounds = array<i64: 128, 256>}, {pipeline_mode = #tpu.pipeline_mode<synchronous>, transform_indices = @transform_2, window_bounds = array<i64: 3, 128, 128>}, {pipeline_mode = #tpu.pipeline_mode<synchronous>, transform_indices = @transform_3, window_bounds = array<i64: 128, 128>}, {pipeline_mode = #tpu.pipeline_mode<synchronous>, transform_indices = @transform_4, window_bounds = array<i64: 1, 128>}, {pipeline_mode = #tpu.pipeline_mode<synchronous>, transform_indices = @transform_5, window_bounds = array<i64: 1, 128>}, {pipeline_mode = #tpu.pipeline_mode<synchronous>, transform_indices = @transform_6, window_bounds = array<i64: 1, 128>}, {transform_indices = @transform_7, window_bounds = array<i64: 32, 128>}]} {
    %c0 = arith.constant 0 : index
    %c0_0 = arith.constant 0 : index
    %0 = vector.load %arg1[%c0, %c0_0] : memref<32x128xbf16, #tpu.memory_space<vmem>>, vector<32x128xbf16>
    %c0_1 = arith.constant 0 : index
    %c0_2 = arith.constant 0 : index
    %1 = vector.load %arg2[%c0_1, %c0_2] : memref<128x256xbf16, #tpu.memory_space<vmem>>, vector<128x256xbf16>
    %cst = arith.constant dense<0.000000e+00> : vector<32x256xf32>
    %2 = tpu.matmul %0, %1, %cst {dimension_numbers = #tpu.dot_dimension_numbers<[1], [0], [0], [1], [0, 0, 1, 1], [], []>} : vector<32x128xbf16>, vector<128x256xbf16>, vector<32x256xf32> -> vector<32x256xf32>
    %3 = vector.extract_strided_slice %2 {offsets = [0, 0], sizes = [32, 128], strides = [1, 1]} : vector<32x256xf32> to vector<32x128xf32>
    %c0_3 = arith.constant 0 : index
    %c0_4 = arith.constant 0 : index
    %4 = vector.load %arg5[%c0_3, %c0_4] : memref<1x128xf32, #tpu.memory_space<vmem>>, vector<1x128xf32>
    %5 = vector.broadcast %4 : vector<1x128xf32> to vector<32x128xf32>
    %6 = arith.addf %3, %5 : vector<32x128xf32>
    %cst_5 = arith.constant 0.000000e+00 : f32
    %7 = vector.broadcast %cst_5 : f32 to vector<32x128xf32>
    %8 = arith.maximumf %6, %7 : vector<32x128xf32>
    %9 = vector.extract_strided_slice %2 {offsets = [0, 128], sizes = [32, 128], strides = [1, 1]} : vector<32x256xf32> to vector<32x128xf32>
    %10 = vector.shape_cast %8 : vector<32x128xf32> to vector<2x16x128xf32>
    %c1_i32 = arith.constant 1 : i32
    %11 = tpu.dynamic_rotate %10 by %c1_i32 dim 1 : vector<2x16x128xf32>, i32 -> vector<2x16x128xf32>
    %c15_i32 = arith.constant 15 : i32
    %12 = tpu.dynamic_rotate %10 by %c15_i32 dim 1 : vector<2x16x128xf32>, i32 -> vector<2x16x128xf32>
    %13 = vector.shape_cast %11 : vector<2x16x128xf32> to vector<32x128xf32>
    %14 = vector.shape_cast %12 : vector<2x16x128xf32> to vector<32x128xf32>
    %15 = arith.truncf %13 : vector<32x128xf32> to vector<32x128xbf16>
    %c0_6 = arith.constant 0 : index
    %c0_7 = arith.constant 0 : index
    %c0_8 = arith.constant 0 : index
    %16 = vector.load %arg3[%c0_6, %c0_7, %c0_8] : memref<3x128x128xbf16, #tpu.memory_space<vmem>>, vector<1x128x128xbf16>
    %17 = vector.shape_cast %16 : vector<1x128x128xbf16> to vector<128x128xbf16>
    %cst_9 = arith.constant dense<0.000000e+00> : vector<32x128xf32>
    %18 = tpu.matmul %15, %17, %cst_9 {dimension_numbers = #tpu.dot_dimension_numbers<[1], [0], [0], [1], [0, 0, 1, 1], [], []>} : vector<32x128xbf16>, vector<128x128xbf16>, vector<32x128xf32> -> vector<32x128xf32>
    %19 = arith.truncf %8 : vector<32x128xf32> to vector<32x128xbf16>
    %c1 = arith.constant 1 : index
    %c0_10 = arith.constant 0 : index
    %c0_11 = arith.constant 0 : index
    %20 = vector.load %arg3[%c1, %c0_10, %c0_11] : memref<3x128x128xbf16, #tpu.memory_space<vmem>>, vector<1x128x128xbf16>
    %21 = vector.shape_cast %20 : vector<1x128x128xbf16> to vector<128x128xbf16>
    %cst_12 = arith.constant dense<0.000000e+00> : vector<32x128xf32>
    %22 = tpu.matmul %19, %21, %cst_12 {dimension_numbers = #tpu.dot_dimension_numbers<[1], [0], [0], [1], [0, 0, 1, 1], [], []>} : vector<32x128xbf16>, vector<128x128xbf16>, vector<32x128xf32> -> vector<32x128xf32>
    %23 = arith.addf %18, %22 : vector<32x128xf32>
    %24 = arith.truncf %14 : vector<32x128xf32> to vector<32x128xbf16>
    %c2 = arith.constant 2 : index
    %c0_13 = arith.constant 0 : index
    %c0_14 = arith.constant 0 : index
    %25 = vector.load %arg3[%c2, %c0_13, %c0_14] : memref<3x128x128xbf16, #tpu.memory_space<vmem>>, vector<1x128x128xbf16>
    %26 = vector.shape_cast %25 : vector<1x128x128xbf16> to vector<128x128xbf16>
    %cst_15 = arith.constant dense<0.000000e+00> : vector<32x128xf32>
    %27 = tpu.matmul %24, %26, %cst_15 {dimension_numbers = #tpu.dot_dimension_numbers<[1], [0], [0], [1], [0, 0, 1, 1], [], []>} : vector<32x128xbf16>, vector<128x128xbf16>, vector<32x128xf32> -> vector<32x128xf32>
    %28 = arith.addf %23, %27 : vector<32x128xf32>
    %c0_16 = arith.constant 0 : index
    %c0_17 = arith.constant 0 : index
    %29 = vector.load %arg6[%c0_16, %c0_17] : memref<1x128xf32, #tpu.memory_space<vmem>>, vector<1x128xf32>
    %30 = vector.broadcast %29 : vector<1x128xf32> to vector<32x128xf32>
    %31 = arith.addf %28, %30 : vector<32x128xf32>
    %cst_18 = arith.constant 0.000000e+00 : f32
    %32 = vector.broadcast %cst_18 : f32 to vector<32x128xf32>
    %33 = arith.maximumf %31, %32 : vector<32x128xf32>
    %34 = arith.truncf %33 : vector<32x128xf32> to vector<32x128xbf16>
    %c0_19 = arith.constant 0 : index
    %c0_20 = arith.constant 0 : index
    %35 = vector.load %arg4[%c0_19, %c0_20] : memref<128x128xbf16, #tpu.memory_space<vmem>>, vector<128x128xbf16>
    %cst_21 = arith.constant dense<0.000000e+00> : vector<32x128xf32>
    %36 = tpu.matmul %34, %35, %cst_21 {dimension_numbers = #tpu.dot_dimension_numbers<[1], [0], [0], [1], [0, 0, 1, 1], [], []>} : vector<32x128xbf16>, vector<128x128xbf16>, vector<32x128xf32> -> vector<32x128xf32>
    %37 = arith.addf %36, %9 : vector<32x128xf32>
    %c0_22 = arith.constant 0 : index
    %c0_23 = arith.constant 0 : index
    %38 = vector.load %arg7[%c0_22, %c0_23] : memref<1x128xf32, #tpu.memory_space<vmem>>, vector<1x128xf32>
    %39 = vector.broadcast %38 : vector<1x128xf32> to vector<32x128xf32>
    %40 = arith.addf %37, %39 : vector<32x128xf32>
    %cst_24 = arith.constant 0.000000e+00 : f32
    %41 = vector.broadcast %cst_24 : f32 to vector<32x128xf32>
    %42 = arith.maximumf %40, %41 : vector<32x128xf32>
    %43 = arith.truncf %42 : vector<32x128xf32> to vector<32x128xbf16>
    %c0_25 = arith.constant 0 : index
    %c0_26 = arith.constant 0 : index
    %44 = vector.load %arg8[%c0_25, %c0_26] : memref<32x128xbf16, #tpu.memory_space<vmem>>, vector<32x128xbf16>
    tpu.vector_store %arg8[%c0_25, %c0_26], %43 {strides = array<i32>} : memref<32x128xbf16, #tpu.memory_space<vmem>>, vector<32x128xbf16>,
    return
  }
  func.func @transform_0(%arg0: i32) -> (i32, i32) {
    %c0_i32 = arith.constant 0 : i32
    %c0_i32_0 = arith.constant 0 : i32
    return %arg0, %c0_i32 : i32, i32
  }
  func.func @transform_1(%arg0: i32) -> (i32, i32) {
    %c0_i32 = arith.constant 0 : i32
    %c0_i32_0 = arith.constant 0 : i32
    %c0_i32_1 = arith.constant 0 : i32
    return %c0_i32, %c0_i32_0 : i32, i32
  }
  func.func @transform_2(%arg0: i32) -> (i32, i32, i32) {
    %c0_i32 = arith.constant 0 : i32
    %c0_i32_0 = arith.constant 0 : i32
    %c0_i32_1 = arith.constant 0 : i32
    %c0_i32_2 = arith.constant 0 : i32
    return %c0_i32, %c0_i32_0, %c0_i32_1 : i32, i32, i32
  }
  func.func @transform_3(%arg0: i32) -> (i32, i32) {
    %c0_i32 = arith.constant 0 : i32
    %c0_i32_0 = arith.constant 0 : i32
    %c0_i32_1 = arith.constant 0 : i32
    return %c0_i32, %c0_i32_0 : i32, i32
  }
  func.func @transform_4(%arg0: i32) -> (i32, i32) {
    %c0_i32 = arith.constant 0 : i32
    %c0_i32_0 = arith.constant 0 : i32
    %c0_i32_1 = arith.constant 0 : i32
    return %c0_i32, %c0_i32_0 : i32, i32
  }
  func.func @transform_5(%arg0: i32) -> (i32, i32) {
    %c0_i32 = arith.constant 0 : i32
    %c0_i32_0 = arith.constant 0 : i32
    %c0_i32_1 = arith.constant 0 : i32
    return %c0_i32, %c0_i32_0 : i32, i32
  }
  func.func @transform_6(%arg0: i32) -> (i32, i32) {
    %c0_i32 = arith.constant 0 : i32
    %c0_i32_0 = arith.constant 0 : i32
    %c0_i32_1 = arith.constant 0 : i32
    return %c0_i32, %c0_i32_0 : i32, i32
  }
  func.func @transform_7(%arg0: i32) -> (i32, i32) {
    %c0_i32 = arith.constant 0 : i32
    %c0_i32_0 = arith.constant 0 : i32
    return %arg0, %c0_i32 : i32, i32
  }
}

module attributes {stable_mosaic.version = 11 : i64} {
  func.func @_bottleneck_kernel(%arg0: i32, %arg1: memref<32x128xbf16, #tpu.memory_space<vmem>>, %arg2: memref<128x256xbf16, #tpu.memory_space<vmem>>, %arg3: memref<3x128x128xbf16, #tpu.memory_space<vmem>>, %arg4: memref<128x128xbf16, #tpu.memory_space<vmem>>, %arg5: memref<1x128xf32, #tpu.memory_space<vmem>>, %arg6: memref<1x128xf32, #tpu.memory_space<vmem>>, %arg7: memref<1x128xf32, #tpu.memory_space<vmem>>, %arg8: memref<32x128xbf16, #tpu.memory_space<vmem>>) attributes {dimension_semantics = [#tpu.dimension_semantics<parallel>], iteration_bounds = array<i64: 1>, scalar_prefetch = 0 : i64, scratch_operands = 0 : i64, tpu.core_type = #tpu.core_type<tc>, window_params = [{transform_indices = @transform_0, window_bounds = array<i64: 32, 128>}, {pipeline_mode = #tpu.pipeline_mode<synchronous>, transform_indices = @transform_1, window_bounds = array<i64: 128, 256>}, {pipeline_mode = #tpu.pipeline_mode<synchronous>, transform_indices = @transform_2, window_bounds = array<i64: 3, 128, 128>}, {pipeline_mode = #tpu.pipeline_mode<synchronous>, transform_indices = @transform_3, window_bounds = array<i64: 128, 128>}, {pipeline_mode = #tpu.pipeline_mode<synchronous>, transform_indices = @transform_4, window_bounds = array<i64: 1, 128>}, {pipeline_mode = #tpu.pipeline_mode<synchronous>, transform_indices = @transform_5, window_bounds = array<i64: 1, 128>}, {pipeline_mode = #tpu.pipeline_mode<synchronous>, transform_indices = @transform_6, window_bounds = array<i64: 1, 128>}, {transform_indices = @transform_7, window_bounds = array<i64: 32, 128>}]} {
    %c0 = arith.constant 0 : index
    %c0_0 = arith.constant 0 : index
    %0 = vector.load %arg1[%c0, %c0_0] : memref<32x128xbf16, #tpu.memory_space<vmem>>, vector<32x128xbf16>
    %c0_1 = arith.constant 0 : index
    %c0_2 = arith.constant 0 : index
    %1 = vector.load %arg2[%c0_1, %c0_2] : memref<128x256xbf16, #tpu.memory_space<vmem>>, vector<128x256xbf16>
    %cst = arith.constant dense<0.000000e+00> : vector<32x256xf32>
    %2 = tpu.matmul %0, %1, %cst {dimension_numbers = #tpu.dot_dimension_numbers<[1], [0], [0], [1], [0, 0, 1, 1], [], []>} : vector<32x128xbf16>, vector<128x256xbf16>, vector<32x256xf32> -> vector<32x256xf32>
    %3 = vector.extract_strided_slice %2 {offsets = [0, 0], sizes = [32, 128], strides = [1, 1]} : vector<32x256xf32> to vector<32x128xf32>
    %c0_3 = arith.constant 0 : index
    %c0_4 = arith.constant 0 : index
    %4 = vector.load %arg5[%c0_3, %c0_4] : memref<1x128xf32, #tpu.memory_space<vmem>>, vector<1x128xf32>
    %5 = vector.broadcast %4 : vector<1x128xf32> to vector<32x128xf32>
    %6 = arith.addf %3, %5 : vector<32x128xf32>
    %cst_5 = arith.constant 0.000000e+00 : f32
    %7 = vector.broadcast %cst_5 : f32 to vector<32x128xf32>
    %8 = arith.maximumf %6, %7 : vector<32x128xf32>
    %9 = vector.extract_strided_slice %2 {offsets = [0, 128], sizes = [32, 128], strides = [1, 1]} : vector<32x256xf32> to vector<32x128xf32>
    %10 = vector.shape_cast %8 : vector<32x128xf32> to vector<2x16x128xf32>
    %c1_i32 = arith.constant 1 : i32
    %11 = tpu.dynamic_rotate %10 by %c1_i32 dim 1 : vector<2x16x128xf32>, i32 -> vector<2x16x128xf32>
    %c15_i32 = arith.constant 15 : i32
    %12 = tpu.dynamic_rotate %10 by %c15_i32 dim 1 : vector<2x16x128xf32>, i32 -> vector<2x16x128xf32>
    %13 = vector.shape_cast %11 : vector<2x16x128xf32> to vector<32x128xf32>
    %14 = vector.shape_cast %12 : vector<2x16x128xf32> to vector<32x128xf32>
    %15 = arith.truncf %13 : vector<32x128xf32> to vector<32x128xbf16>
    %c0_6 = arith.constant 0 : index
    %c0_7 = arith.constant 0 : index
    %c0_8 = arith.constant 0 : index
    %16 = vector.load %arg3[%c0_6, %c0_7, %c0_8] : memref<3x128x128xbf16, #tpu.memory_space<vmem>>, vector<1x128x128xbf16>
    %17 = vector.shape_cast %16 : vector<1x128x128xbf16> to vector<128x128xbf16>
    %cst_9 = arith.constant dense<0.000000e+00> : vector<32x128xf32>
    %18 = tpu.matmul %15, %17, %cst_9 {dimension_numbers = #tpu.dot_dimension_numbers<[1], [0], [0], [1], [0, 0, 1, 1], [], []>} : vector<32x128xbf16>, vector<128x128xbf16>, vector<32x128xf32> -> vector<32x128xf32>
    %19 = arith.truncf %8 : vector<32x128xf32> to vector<32x128xbf16>
    %c1 = arith.constant 1 : index
    %c0_10 = arith.constant 0 : index
    %c0_11 = arith.constant 0 : index
    %20 = vector.load %arg3[%c1, %c0_10, %c0_11] : memref<3x128x128xbf16, #tpu.memory_space<vmem>>, vector<1x128x128xbf16>
    %21 = vector.shape_cast %20 : vector<1x128x128xbf16> to vector<128x128xbf16>
    %cst_12 = arith.constant dense<0.000000e+00> : vector<32x128xf32>
    %22 = tpu.matmul %19, %21, %cst_12 {dimension_numbers = #tpu.dot_dimension_numbers<[1], [0], [0], [1], [0, 0, 1, 1], [], []>} : vector<32x128xbf16>, vector<128x128xbf16>, vector<32x128xf32> -> vector<32x128xf32>
    %23 = arith.addf %18, %22 : vector<32x128xf32>
    %24 = arith.truncf %14 : vector<32x128xf32> to vector<32x128xbf16>
    %c2 = arith.constant 2 : index
    %c0_13 = arith.constant 0 : index
    %c0_14 = arith.constant 0 : index
    %25 = vector.load %arg3[%c2, %c0_13, %c0_14] : memref<3x128x128xbf16, #tpu.memory_space<vmem>>, vector<1x128x128xbf16>
    %26 = vector.shape_cast %25 : vector<1x128x128xbf16> to vector<128x128xbf16>
    %cst_15 = arith.constant dense<0.000000e+00> : vector<32x128xf32>
    %27 = tpu.matmul %24, %26, %cst_15 {dimension_numbers = #tpu.dot_dimension_numbers<[1], [0], [0], [1], [0, 0, 1, 1], [], []>} : vector<32x128xbf16>, vector<128x128xbf16>, vector<32x128xf32> -> vector<32x128xf32>
    %28 = arith.addf %23, %27 : vector<32x128xf32>
    %c0_16 = arith.constant 0 : index
    %c0_17 = arith.constant 0 : index
    %29 = vector.load %arg6[%c0_16, %c0_17] : memref<1x128xf32, #tpu.memory_space<vmem>>, vector<1x128xf32>
    %30 = vector.broadcast %29 : vector<1x128xf32> to vector<32x128xf32>
    %31 = arith.addf %28, %30 : vector<32x128xf32>
    %cst_18 = arith.constant 0.000000e+00 : f32
    %32 = vector.broadcast %cst_18 : f32 to vector<32x128xf32>
    %33 = arith.maximumf %31, %32 : vector<32x128xf32>
    %34 = arith.truncf %33 : vector<32x128xf32> to vector<32x128xbf16>
    %c0_19 = arith.constant 0 : index
    %c0_20 = arith.constant 0 : index
    %35 = vector.load %arg4[%c0_19, %c0_20] : memref<128x128xbf16, #tpu.memory_space<vmem>>, vector<128x128xbf16>
    %cst_21 = arith.constant dense<0.000000e+00> : vector<32x128xf32>
    %36 = tpu.matmul %34, %35, %cst_21 {dimension_numbers = #tpu.dot_dimension_numbers<[1], [0], [0], [1], [0, 0, 1, 1], [], []>} : vector<32x128xbf16>, vector<128x128xbf16>, vector<32x128xf32> -> vector<32x128xf32>
    %37 = arith.addf %36, %9 : vector<32x128xf32>
    %c0_22 = arith.constant 0 : index
    %c0_23 = arith.constant 0 : index
    %38 = vector.load %arg7[%c0_22, %c0_23] : memref<1x128xf32, #tpu.memory_space<vmem>>, vector<1x128xf32>
    %39 = vector.broadcast %38 : vector<1x128xf32> to vector<32x128xf32>
    %40 = arith.addf %37, %39 : vector<32x128xf32>
    %cst_24 = arith.constant 0.000000e+00 : f32
    %41 = vector.broadcast %cst_24 : f32 to vector<32x128xf32>
    %42 = arith.maximumf %40, %41 : vector<32x128xf32>
    %43 = arith.truncf %42 : vector<32x128xf32> to vector<32x128xbf16>
    %c0_25 = arith.constant 0 : index
    %c0_26 = arith.constant 0 : index
    %44 = vector.load %arg8[%c0_25, %c0_26] : memref<32x128xbf16, #tpu.memory_space<vmem>>, vector<32x128xbf16>
    tpu.vector_store %arg8[%c0_25, %c0_26], %43 {strides = array<i32>} : memref<32x128xbf16, #tpu.memory_space<vmem>>, vector<32x128xbf16>,
    return
  }
  func.func @transform_0(%arg0: i32) -> (i32, i32) {
    %c0_i32 = arith.constant 0 : i32
    %c0_i32_0 = arith.constant 0 : i32
    return %arg0, %c0_i32 : i32, i32
  }
  func.func @transform_1(%arg0: i32) -> (i32, i32) {
    %c0_i32 = arith.constant 0 : i32
    %c0_i32_0 = arith.constant 0 : i32
    %c0_i32_1 = arith.constant 0 : i32
    return %c0_i32, %c0_i32_0 : i32, i32
  }
  func.func @transform_2(%arg0: i32) -> (i32, i32, i32) {
    %c0_i32 = arith.constant 0 : i32
    %c0_i32_0 = arith.constant 0 : i32
    %c0_i32_1 = arith.constant 0 : i32
    %c0_i32_2 = arith.constant 0 : i32
    return %c0_i32, %c0_i32_0, %c0_i32_1 : i32, i32, i32
  }
  func.func @transform_3(%arg0: i32) -> (i32, i32) {
    %c0_i32 = arith.constant 0 : i32
    %c0_i32_0 = arith.constant 0 : i32
    %c0_i32_1 = arith.constant 0 : i32
    return %c0_i32, %c0_i32_0 : i32, i32
  }
  func.func @transform_4(%arg0: i32) -> (i32, i32) {
    %c0_i32 = arith.constant 0 : i32
    %c0_i32_0 = arith.constant 0 : i32
    %c0_i32_1 = arith.constant 0 : i32
    return %c0_i32, %c0_i32_0 : i32, i32
  }
  func.func @transform_5(%arg0: i32) -> (i32, i32) {
    %c0_i32 = arith.constant 0 : i32
    %c0_i32_0 = arith.constant 0 : i32
    %c0_i32_1 = arith.constant 0 : i32
    return %c0_i32, %c0_i32_0 : i32, i32
  }
  func.func @transform_6(%arg0: i32) -> (i32, i32) {
    %c0_i32 = arith.constant 0 : i32
    %c0_i32_0 = arith.constant 0 : i32
    %c0_i32_1 = arith.constant 0 : i32
    return %c0_i32, %c0_i32_0 : i32, i32
  }
  func.func @transform_7(%arg0: i32) -> (i32, i32) {
    %c0_i32 = arith.constant 0 : i32
    %c0_i32_0 = arith.constant 0 : i32
    return %arg0, %c0_i32 : i32, i32
  }
}

module attributes {stable_mosaic.version = 11 : i64} {
  func.func @_bottleneck_kernel(%arg0: i32, %arg1: memref<32x128xbf16, #tpu.memory_space<vmem>>, %arg2: memref<128x256xbf16, #tpu.memory_space<vmem>>, %arg3: memref<3x128x128xbf16, #tpu.memory_space<vmem>>, %arg4: memref<128x128xbf16, #tpu.memory_space<vmem>>, %arg5: memref<1x128xf32, #tpu.memory_space<vmem>>, %arg6: memref<1x128xf32, #tpu.memory_space<vmem>>, %arg7: memref<1x128xf32, #tpu.memory_space<vmem>>, %arg8: memref<32x128xbf16, #tpu.memory_space<vmem>>) attributes {dimension_semantics = [#tpu.dimension_semantics<parallel>], iteration_bounds = array<i64: 1>, scalar_prefetch = 0 : i64, scratch_operands = 0 : i64, tpu.core_type = #tpu.core_type<tc>, window_params = [{transform_indices = @transform_0, window_bounds = array<i64: 32, 128>}, {pipeline_mode = #tpu.pipeline_mode<synchronous>, transform_indices = @transform_1, window_bounds = array<i64: 128, 256>}, {pipeline_mode = #tpu.pipeline_mode<synchronous>, transform_indices = @transform_2, window_bounds = array<i64: 3, 128, 128>}, {pipeline_mode = #tpu.pipeline_mode<synchronous>, transform_indices = @transform_3, window_bounds = array<i64: 128, 128>}, {pipeline_mode = #tpu.pipeline_mode<synchronous>, transform_indices = @transform_4, window_bounds = array<i64: 1, 128>}, {pipeline_mode = #tpu.pipeline_mode<synchronous>, transform_indices = @transform_5, window_bounds = array<i64: 1, 128>}, {pipeline_mode = #tpu.pipeline_mode<synchronous>, transform_indices = @transform_6, window_bounds = array<i64: 1, 128>}, {transform_indices = @transform_7, window_bounds = array<i64: 32, 128>}]} {
    %c0 = arith.constant 0 : index
    %c0_0 = arith.constant 0 : index
    %0 = vector.load %arg1[%c0, %c0_0] : memref<32x128xbf16, #tpu.memory_space<vmem>>, vector<32x128xbf16>
    %c0_1 = arith.constant 0 : index
    %c0_2 = arith.constant 0 : index
    %1 = vector.load %arg2[%c0_1, %c0_2] : memref<128x256xbf16, #tpu.memory_space<vmem>>, vector<128x256xbf16>
    %cst = arith.constant dense<0.000000e+00> : vector<32x256xf32>
    %2 = tpu.matmul %0, %1, %cst {dimension_numbers = #tpu.dot_dimension_numbers<[1], [0], [0], [1], [0, 0, 1, 1], [], []>} : vector<32x128xbf16>, vector<128x256xbf16>, vector<32x256xf32> -> vector<32x256xf32>
    %3 = vector.extract_strided_slice %2 {offsets = [0, 0], sizes = [32, 128], strides = [1, 1]} : vector<32x256xf32> to vector<32x128xf32>
    %c0_3 = arith.constant 0 : index
    %c0_4 = arith.constant 0 : index
    %4 = vector.load %arg5[%c0_3, %c0_4] : memref<1x128xf32, #tpu.memory_space<vmem>>, vector<1x128xf32>
    %5 = vector.broadcast %4 : vector<1x128xf32> to vector<32x128xf32>
    %6 = arith.addf %3, %5 : vector<32x128xf32>
    %cst_5 = arith.constant 0.000000e+00 : f32
    %7 = vector.broadcast %cst_5 : f32 to vector<32x128xf32>
    %8 = arith.maximumf %6, %7 : vector<32x128xf32>
    %9 = vector.extract_strided_slice %2 {offsets = [0, 128], sizes = [32, 128], strides = [1, 1]} : vector<32x256xf32> to vector<32x128xf32>
    %10 = vector.shape_cast %8 : vector<32x128xf32> to vector<2x16x128xf32>
    %11 = vector.extract_strided_slice %10 {offsets = [0, 15, 0], sizes = [2, 1, 128], strides = [1, 1, 1]} : vector<2x16x128xf32> to vector<2x1x128xf32>
    %12 = vector.extract_strided_slice %10 {offsets = [0, 0, 0], sizes = [2, 15, 128], strides = [1, 1, 1]} : vector<2x16x128xf32> to vector<2x15x128xf32>
    %13 = tpu.concatenate %11, %12 in 1 : vector<2x1x128xf32>, vector<2x15x128xf32> -> vector<2x16x128xf32>
    %14 = vector.extract_strided_slice %10 {offsets = [0, 1, 0], sizes = [2, 15, 128], strides = [1, 1, 1]} : vector<2x16x128xf32> to vector<2x15x128xf32>
    %15 = vector.extract_strided_slice %10 {offsets = [0, 0, 0], sizes = [2, 1, 128], strides = [1, 1, 1]} : vector<2x16x128xf32> to vector<2x1x128xf32>
    %16 = tpu.concatenate %14, %15 in 1 : vector<2x15x128xf32>, vector<2x1x128xf32> -> vector<2x16x128xf32>
    %17 = vector.shape_cast %13 : vector<2x16x128xf32> to vector<32x128xf32>
    %18 = vector.shape_cast %16 : vector<2x16x128xf32> to vector<32x128xf32>
    %19 = arith.truncf %17 : vector<32x128xf32> to vector<32x128xbf16>
    %c0_6 = arith.constant 0 : index
    %c0_7 = arith.constant 0 : index
    %c0_8 = arith.constant 0 : index
    %20 = vector.load %arg3[%c0_6, %c0_7, %c0_8] : memref<3x128x128xbf16, #tpu.memory_space<vmem>>, vector<1x128x128xbf16>
    %21 = vector.shape_cast %20 : vector<1x128x128xbf16> to vector<128x128xbf16>
    %cst_9 = arith.constant dense<0.000000e+00> : vector<32x128xf32>
    %22 = tpu.matmul %19, %21, %cst_9 {dimension_numbers = #tpu.dot_dimension_numbers<[1], [0], [0], [1], [0, 0, 1, 1], [], []>} : vector<32x128xbf16>, vector<128x128xbf16>, vector<32x128xf32> -> vector<32x128xf32>
    %23 = arith.truncf %8 : vector<32x128xf32> to vector<32x128xbf16>
    %c1 = arith.constant 1 : index
    %c0_10 = arith.constant 0 : index
    %c0_11 = arith.constant 0 : index
    %24 = vector.load %arg3[%c1, %c0_10, %c0_11] : memref<3x128x128xbf16, #tpu.memory_space<vmem>>, vector<1x128x128xbf16>
    %25 = vector.shape_cast %24 : vector<1x128x128xbf16> to vector<128x128xbf16>
    %cst_12 = arith.constant dense<0.000000e+00> : vector<32x128xf32>
    %26 = tpu.matmul %23, %25, %cst_12 {dimension_numbers = #tpu.dot_dimension_numbers<[1], [0], [0], [1], [0, 0, 1, 1], [], []>} : vector<32x128xbf16>, vector<128x128xbf16>, vector<32x128xf32> -> vector<32x128xf32>
    %27 = arith.addf %22, %26 : vector<32x128xf32>
    %28 = arith.truncf %18 : vector<32x128xf32> to vector<32x128xbf16>
    %c2 = arith.constant 2 : index
    %c0_13 = arith.constant 0 : index
    %c0_14 = arith.constant 0 : index
    %29 = vector.load %arg3[%c2, %c0_13, %c0_14] : memref<3x128x128xbf16, #tpu.memory_space<vmem>>, vector<1x128x128xbf16>
    %30 = vector.shape_cast %29 : vector<1x128x128xbf16> to vector<128x128xbf16>
    %cst_15 = arith.constant dense<0.000000e+00> : vector<32x128xf32>
    %31 = tpu.matmul %28, %30, %cst_15 {dimension_numbers = #tpu.dot_dimension_numbers<[1], [0], [0], [1], [0, 0, 1, 1], [], []>} : vector<32x128xbf16>, vector<128x128xbf16>, vector<32x128xf32> -> vector<32x128xf32>
    %32 = arith.addf %27, %31 : vector<32x128xf32>
    %c0_16 = arith.constant 0 : index
    %c0_17 = arith.constant 0 : index
    %33 = vector.load %arg6[%c0_16, %c0_17] : memref<1x128xf32, #tpu.memory_space<vmem>>, vector<1x128xf32>
    %34 = vector.broadcast %33 : vector<1x128xf32> to vector<32x128xf32>
    %35 = arith.addf %32, %34 : vector<32x128xf32>
    %cst_18 = arith.constant 0.000000e+00 : f32
    %36 = vector.broadcast %cst_18 : f32 to vector<32x128xf32>
    %37 = arith.maximumf %35, %36 : vector<32x128xf32>
    %38 = arith.truncf %37 : vector<32x128xf32> to vector<32x128xbf16>
    %c0_19 = arith.constant 0 : index
    %c0_20 = arith.constant 0 : index
    %39 = vector.load %arg4[%c0_19, %c0_20] : memref<128x128xbf16, #tpu.memory_space<vmem>>, vector<128x128xbf16>
    %cst_21 = arith.constant dense<0.000000e+00> : vector<32x128xf32>
    %40 = tpu.matmul %38, %39, %cst_21 {dimension_numbers = #tpu.dot_dimension_numbers<[1], [0], [0], [1], [0, 0, 1, 1], [], []>} : vector<32x128xbf16>, vector<128x128xbf16>, vector<32x128xf32> -> vector<32x128xf32>
    %41 = arith.addf %40, %9 : vector<32x128xf32>
    %c0_22 = arith.constant 0 : index
    %c0_23 = arith.constant 0 : index
    %42 = vector.load %arg7[%c0_22, %c0_23] : memref<1x128xf32, #tpu.memory_space<vmem>>, vector<1x128xf32>
    %43 = vector.broadcast %42 : vector<1x128xf32> to vector<32x128xf32>
    %44 = arith.addf %41, %43 : vector<32x128xf32>
    %cst_24 = arith.constant 0.000000e+00 : f32
    %45 = vector.broadcast %cst_24 : f32 to vector<32x128xf32>
    %46 = arith.maximumf %44, %45 : vector<32x128xf32>
    %47 = arith.truncf %46 : vector<32x128xf32> to vector<32x128xbf16>
    %c0_25 = arith.constant 0 : index
    %c0_26 = arith.constant 0 : index
    %48 = vector.load %arg8[%c0_25, %c0_26] : memref<32x128xbf16, #tpu.memory_space<vmem>>, vector<32x128xbf16>
    tpu.vector_store %arg8[%c0_25, %c0_26], %47 {strides = array<i32>} : memref<32x128xbf16, #tpu.memory_space<vmem>>, vector<32x128xbf16>,
    return
  }
  func.func @transform_0(%arg0: i32) -> (i32, i32) {
    %c0_i32 = arith.constant 0 : i32
    %c0_i32_0 = arith.constant 0 : i32
    return %arg0, %c0_i32 : i32, i32
  }
  func.func @transform_1(%arg0: i32) -> (i32, i32) {
    %c0_i32 = arith.constant 0 : i32
    %c0_i32_0 = arith.constant 0 : i32
    %c0_i32_1 = arith.constant 0 : i32
    return %c0_i32, %c0_i32_0 : i32, i32
  }
  func.func @transform_2(%arg0: i32) -> (i32, i32, i32) {
    %c0_i32 = arith.constant 0 : i32
    %c0_i32_0 = arith.constant 0 : i32
    %c0_i32_1 = arith.constant 0 : i32
    %c0_i32_2 = arith.constant 0 : i32
    return %c0_i32, %c0_i32_0, %c0_i32_1 : i32, i32, i32
  }
  func.func @transform_3(%arg0: i32) -> (i32, i32) {
    %c0_i32 = arith.constant 0 : i32
    %c0_i32_0 = arith.constant 0 : i32
    %c0_i32_1 = arith.constant 0 : i32
    return %c0_i32, %c0_i32_0 : i32, i32
  }
  func.func @transform_4(%arg0: i32) -> (i32, i32) {
    %c0_i32 = arith.constant 0 : i32
    %c0_i32_0 = arith.constant 0 : i32
    %c0_i32_1 = arith.constant 0 : i32
    return %c0_i32, %c0_i32_0 : i32, i32
  }
  func.func @transform_5(%arg0: i32) -> (i32, i32) {
    %c0_i32 = arith.constant 0 : i32
    %c0_i32_0 = arith.constant 0 : i32
    %c0_i32_1 = arith.constant 0 : i32
    return %c0_i32, %c0_i32_0 : i32, i32
  }
  func.func @transform_6(%arg0: i32) -> (i32, i32) {
    %c0_i32 = arith.constant 0 : i32
    %c0_i32_0 = arith.constant 0 : i32
    %c0_i32_1 = arith.constant 0 : i32
    return %c0_i32, %c0_i32_0 : i32, i32
  }
  func.func @transform_7(%arg0: i32) -> (i32, i32) {
    %c0_i32 = arith.constant 0 : i32
    %c0_i32_0 = arith.constant 0 : i32
    return %arg0, %c0_i32 : i32, i32
  }
}

module attributes {stable_mosaic.version = 11 : i64} {
  func.func @_bottleneck_kernel(%arg0: i32, %arg1: memref<32x128xbf16, #tpu.memory_space<vmem>>, %arg2: memref<128x256xbf16, #tpu.memory_space<vmem>>, %arg3: memref<3x128x128xbf16, #tpu.memory_space<vmem>>, %arg4: memref<128x128xbf16, #tpu.memory_space<vmem>>, %arg5: memref<1x128xf32, #tpu.memory_space<vmem>>, %arg6: memref<1x128xf32, #tpu.memory_space<vmem>>, %arg7: memref<1x128xf32, #tpu.memory_space<vmem>>, %arg8: memref<32x128xbf16, #tpu.memory_space<vmem>>) attributes {dimension_semantics = [#tpu.dimension_semantics<parallel>], iteration_bounds = array<i64: 1>, scalar_prefetch = 0 : i64, scratch_operands = 0 : i64, tpu.core_type = #tpu.core_type<tc>, window_params = [{transform_indices = @transform_0, window_bounds = array<i64: 32, 128>}, {pipeline_mode = #tpu.pipeline_mode<synchronous>, transform_indices = @transform_1, window_bounds = array<i64: 128, 256>}, {pipeline_mode = #tpu.pipeline_mode<synchronous>, transform_indices = @transform_2, window_bounds = array<i64: 3, 128, 128>}, {pipeline_mode = #tpu.pipeline_mode<synchronous>, transform_indices = @transform_3, window_bounds = array<i64: 128, 128>}, {pipeline_mode = #tpu.pipeline_mode<synchronous>, transform_indices = @transform_4, window_bounds = array<i64: 1, 128>}, {pipeline_mode = #tpu.pipeline_mode<synchronous>, transform_indices = @transform_5, window_bounds = array<i64: 1, 128>}, {pipeline_mode = #tpu.pipeline_mode<synchronous>, transform_indices = @transform_6, window_bounds = array<i64: 1, 128>}, {transform_indices = @transform_7, window_bounds = array<i64: 32, 128>}]} {
    %c0 = arith.constant 0 : index
    %c0_0 = arith.constant 0 : index
    %0 = vector.load %arg1[%c0, %c0_0] : memref<32x128xbf16, #tpu.memory_space<vmem>>, vector<32x128xbf16>
    %c0_1 = arith.constant 0 : index
    %c0_2 = arith.constant 0 : index
    %1 = vector.load %arg2[%c0_1, %c0_2] : memref<128x256xbf16, #tpu.memory_space<vmem>>, vector<128x256xbf16>
    %cst = arith.constant dense<0.000000e+00> : vector<32x256xf32>
    %2 = tpu.matmul %0, %1, %cst {dimension_numbers = #tpu.dot_dimension_numbers<[1], [0], [0], [1], [0, 0, 1, 1], [], []>} : vector<32x128xbf16>, vector<128x256xbf16>, vector<32x256xf32> -> vector<32x256xf32>
    %3 = vector.extract_strided_slice %2 {offsets = [0, 0], sizes = [32, 128], strides = [1, 1]} : vector<32x256xf32> to vector<32x128xf32>
    %c0_3 = arith.constant 0 : index
    %c0_4 = arith.constant 0 : index
    %4 = vector.load %arg5[%c0_3, %c0_4] : memref<1x128xf32, #tpu.memory_space<vmem>>, vector<1x128xf32>
    %5 = vector.broadcast %4 : vector<1x128xf32> to vector<32x128xf32>
    %6 = arith.addf %3, %5 : vector<32x128xf32>
    %cst_5 = arith.constant 0.000000e+00 : f32
    %7 = vector.broadcast %cst_5 : f32 to vector<32x128xf32>
    %8 = arith.maximumf %6, %7 : vector<32x128xf32>
    %9 = vector.extract_strided_slice %2 {offsets = [0, 128], sizes = [32, 128], strides = [1, 1]} : vector<32x256xf32> to vector<32x128xf32>
    %10 = vector.shape_cast %8 : vector<32x128xf32> to vector<2x16x128xf32>
    %11 = vector.extract_strided_slice %10 {offsets = [0, 15, 0], sizes = [2, 1, 128], strides = [1, 1, 1]} : vector<2x16x128xf32> to vector<2x1x128xf32>
    %12 = vector.extract_strided_slice %10 {offsets = [0, 0, 0], sizes = [2, 15, 128], strides = [1, 1, 1]} : vector<2x16x128xf32> to vector<2x15x128xf32>
    %13 = tpu.concatenate %11, %12 in 1 : vector<2x1x128xf32>, vector<2x15x128xf32> -> vector<2x16x128xf32>
    %14 = vector.extract_strided_slice %10 {offsets = [0, 1, 0], sizes = [2, 15, 128], strides = [1, 1, 1]} : vector<2x16x128xf32> to vector<2x15x128xf32>
    %15 = vector.extract_strided_slice %10 {offsets = [0, 0, 0], sizes = [2, 1, 128], strides = [1, 1, 1]} : vector<2x16x128xf32> to vector<2x1x128xf32>
    %16 = tpu.concatenate %14, %15 in 1 : vector<2x15x128xf32>, vector<2x1x128xf32> -> vector<2x16x128xf32>
    %17 = vector.shape_cast %13 : vector<2x16x128xf32> to vector<32x128xf32>
    %18 = vector.shape_cast %16 : vector<2x16x128xf32> to vector<32x128xf32>
    %19 = arith.truncf %17 : vector<32x128xf32> to vector<32x128xbf16>
    %c0_6 = arith.constant 0 : index
    %c0_7 = arith.constant 0 : index
    %c0_8 = arith.constant 0 : index
    %20 = vector.load %arg3[%c0_6, %c0_7, %c0_8] : memref<3x128x128xbf16, #tpu.memory_space<vmem>>, vector<1x128x128xbf16>
    %21 = vector.shape_cast %20 : vector<1x128x128xbf16> to vector<128x128xbf16>
    %cst_9 = arith.constant dense<0.000000e+00> : vector<32x128xf32>
    %22 = tpu.matmul %19, %21, %cst_9 {dimension_numbers = #tpu.dot_dimension_numbers<[1], [0], [0], [1], [0, 0, 1, 1], [], []>} : vector<32x128xbf16>, vector<128x128xbf16>, vector<32x128xf32> -> vector<32x128xf32>
    %23 = arith.truncf %8 : vector<32x128xf32> to vector<32x128xbf16>
    %c1 = arith.constant 1 : index
    %c0_10 = arith.constant 0 : index
    %c0_11 = arith.constant 0 : index
    %24 = vector.load %arg3[%c1, %c0_10, %c0_11] : memref<3x128x128xbf16, #tpu.memory_space<vmem>>, vector<1x128x128xbf16>
    %25 = vector.shape_cast %24 : vector<1x128x128xbf16> to vector<128x128xbf16>
    %cst_12 = arith.constant dense<0.000000e+00> : vector<32x128xf32>
    %26 = tpu.matmul %23, %25, %cst_12 {dimension_numbers = #tpu.dot_dimension_numbers<[1], [0], [0], [1], [0, 0, 1, 1], [], []>} : vector<32x128xbf16>, vector<128x128xbf16>, vector<32x128xf32> -> vector<32x128xf32>
    %27 = arith.addf %22, %26 : vector<32x128xf32>
    %28 = arith.truncf %18 : vector<32x128xf32> to vector<32x128xbf16>
    %c2 = arith.constant 2 : index
    %c0_13 = arith.constant 0 : index
    %c0_14 = arith.constant 0 : index
    %29 = vector.load %arg3[%c2, %c0_13, %c0_14] : memref<3x128x128xbf16, #tpu.memory_space<vmem>>, vector<1x128x128xbf16>
    %30 = vector.shape_cast %29 : vector<1x128x128xbf16> to vector<128x128xbf16>
    %cst_15 = arith.constant dense<0.000000e+00> : vector<32x128xf32>
    %31 = tpu.matmul %28, %30, %cst_15 {dimension_numbers = #tpu.dot_dimension_numbers<[1], [0], [0], [1], [0, 0, 1, 1], [], []>} : vector<32x128xbf16>, vector<128x128xbf16>, vector<32x128xf32> -> vector<32x128xf32>
    %32 = arith.addf %27, %31 : vector<32x128xf32>
    %c0_16 = arith.constant 0 : index
    %c0_17 = arith.constant 0 : index
    %33 = vector.load %arg6[%c0_16, %c0_17] : memref<1x128xf32, #tpu.memory_space<vmem>>, vector<1x128xf32>
    %34 = vector.broadcast %33 : vector<1x128xf32> to vector<32x128xf32>
    %35 = arith.addf %32, %34 : vector<32x128xf32>
    %cst_18 = arith.constant 0.000000e+00 : f32
    %36 = vector.broadcast %cst_18 : f32 to vector<32x128xf32>
    %37 = arith.maximumf %35, %36 : vector<32x128xf32>
    %38 = arith.truncf %37 : vector<32x128xf32> to vector<32x128xbf16>
    %c0_19 = arith.constant 0 : index
    %c0_20 = arith.constant 0 : index
    %39 = vector.load %arg4[%c0_19, %c0_20] : memref<128x128xbf16, #tpu.memory_space<vmem>>, vector<128x128xbf16>
    %cst_21 = arith.constant dense<0.000000e+00> : vector<32x128xf32>
    %40 = tpu.matmul %38, %39, %cst_21 {dimension_numbers = #tpu.dot_dimension_numbers<[1], [0], [0], [1], [0, 0, 1, 1], [], []>} : vector<32x128xbf16>, vector<128x128xbf16>, vector<32x128xf32> -> vector<32x128xf32>
    %41 = arith.addf %40, %9 : vector<32x128xf32>
    %c0_22 = arith.constant 0 : index
    %c0_23 = arith.constant 0 : index
    %42 = vector.load %arg7[%c0_22, %c0_23] : memref<1x128xf32, #tpu.memory_space<vmem>>, vector<1x128xf32>
    %43 = vector.broadcast %42 : vector<1x128xf32> to vector<32x128xf32>
    %44 = arith.addf %41, %43 : vector<32x128xf32>
    %cst_24 = arith.constant 0.000000e+00 : f32
    %45 = vector.broadcast %cst_24 : f32 to vector<32x128xf32>
    %46 = arith.maximumf %44, %45 : vector<32x128xf32>
    %47 = arith.truncf %46 : vector<32x128xf32> to vector<32x128xbf16>
    %c0_25 = arith.constant 0 : index
    %c0_26 = arith.constant 0 : index
    %48 = vector.load %arg8[%c0_25, %c0_26] : memref<32x128xbf16, #tpu.memory_space<vmem>>, vector<32x128xbf16>
    tpu.vector_store %arg8[%c0_25, %c0_26], %47 {strides = array<i32>} : memref<32x128xbf16, #tpu.memory_space<vmem>>, vector<32x128xbf16>,
    return
  }
  func.func @transform_0(%arg0: i32) -> (i32, i32) {
    %c0_i32 = arith.constant 0 : i32
    %c0_i32_0 = arith.constant 0 : i32
    return %arg0, %c0_i32 : i32, i32
  }
  func.func @transform_1(%arg0: i32) -> (i32, i32) {
    %c0_i32 = arith.constant 0 : i32
    %c0_i32_0 = arith.constant 0 : i32
    %c0_i32_1 = arith.constant 0 : i32
    return %c0_i32, %c0_i32_0 : i32, i32
  }
  func.func @transform_2(%arg0: i32) -> (i32, i32, i32) {
    %c0_i32 = arith.constant 0 : i32
    %c0_i32_0 = arith.constant 0 : i32
    %c0_i32_1 = arith.constant 0 : i32
    %c0_i32_2 = arith.constant 0 : i32
    return %c0_i32, %c0_i32_0, %c0_i32_1 : i32, i32, i32
  }
  func.func @transform_3(%arg0: i32) -> (i32, i32) {
    %c0_i32 = arith.constant 0 : i32
    %c0_i32_0 = arith.constant 0 : i32
    %c0_i32_1 = arith.constant 0 : i32
    return %c0_i32, %c0_i32_0 : i32, i32
  }
  func.func @transform_4(%arg0: i32) -> (i32, i32) {
    %c0_i32 = arith.constant 0 : i32
    %c0_i32_0 = arith.constant 0 : i32
    %c0_i32_1 = arith.constant 0 : i32
    return %c0_i32, %c0_i32_0 : i32, i32
  }
  func.func @transform_5(%arg0: i32) -> (i32, i32) {
    %c0_i32 = arith.constant 0 : i32
    %c0_i32_0 = arith.constant 0 : i32
    %c0_i32_1 = arith.constant 0 : i32
    return %c0_i32, %c0_i32_0 : i32, i32
  }
  func.func @transform_6(%arg0: i32) -> (i32, i32) {
    %c0_i32 = arith.constant 0 : i32
    %c0_i32_0 = arith.constant 0 : i32
    %c0_i32_1 = arith.constant 0 : i32
    return %c0_i32, %c0_i32_0 : i32, i32
  }
  func.func @transform_7(%arg0: i32) -> (i32, i32) {
    %c0_i32 = arith.constant 0 : i32
    %c0_i32_0 = arith.constant 0 : i32
    return %arg0, %c0_i32 : i32, i32
  }
}

</mosaic_0001>

<bundles_post_ra>
// kernel: tpu_custom_call.1
= control target key start
LH: loop header
LB: loop body
LE: loop exit
PB: predicated region body
PF: predicated region fallthrough
CT: control target
= control target key end

     0   :  { %12 = vsyncpa [#allocation3], 0  ;;  %s1289_s0 = inlined_call_operand.hbm [shape: bf16[32,128], index: 0, kind: input, shape index: {}]   ;;  %s1290_s1 = inlined_call_operand.hbm [shape: bf16[128,256], index: 1, kind: input, shape index: {}]   ;;  %s1291_s2 = inlined_call_operand.hbm [shape: bf16[3,128,128], index: 2, kind: input, shape index: {}]   ;;  %s1292_s3 = inlined_call_operand.hbm [shape: bf16[128,128], index: 3, kind: input, shape index: {}]   ;;  %s1293_s4 = inlined_call_operand.vmem [shape: f32[1,128], index: 4, kind: input, shape index: {}]   ;;  %s1294_s5 = inlined_call_operand.vmem [shape: f32[1,128], index: 5, kind: input, shape index: {}]   ;;  %s1295_s6 = inlined_call_operand.vmem [shape: f32[1,128], index: 6, kind: input, shape index: {}]   ;;  %s1296_s7 = inlined_call_operand.hbm [shape: bf16[32,128], index: 7, kind: output, shape index: {}]  }
   0x1   :  { %13 = vsyncpa [#allocation6], 0 }
   0x2   :  { %14 = vsyncpa [#allocation9], 0 }
   0x3   :  { %15 = vsyncpa [#allocation4], 0  ;;  %s1186_s24 = smov [#allocation5]  }
   0x4   :  { %s33_s25 = sshll.u32 %s1186_s24, 4  ;;  %s34_s25 = int_to_ptr.vmem [resolvable:$true] %s33_s25 }
   0x5   :  { %s1086_s26 = scalar_lea.vmem %s34_s25, 2048  ;;  %p1091_p1 = scmp.lt.s32.totalorder %s34_s25, %s34_s25 }
   0x6   :  { %p1087_p0 = scmp.ne.s32.totalorder %s34_s25, %s1086_s26  ;;  %p1092_p2 = scmp.lt.s32.totalorder %s1086_s26, %s1086_s26 }
   0x8   :  { %p1093_p3 = por %p1092_p2, %p1091_p1 }
   0xa   :  { %p1094_p4 = pnand %p1093_p3, %p1087_p0 }
   0xc   :  { %1097 = shalt.err (!%p1094_p4)
}
   0xd   :  { %s1187_s27 = smov 128   ;;  %s1188_s28 = smov 8  }
   0xe   :  { %39 = dma.hbm_to_vmem [thread:$0]  %s1290_s1, 2048, %s34_s25, [#allocation6], %s1187_s27, %s1187_s27, %s1188_s28  }
   0xf   :  { %s1189_s8 = smov [#allocation2]  }
  0x10   :  { %s21_s9 = sshll.u32 %s1189_s8, 4  ;;  %s22_s9 = int_to_ptr.vmem [resolvable:$true] %s21_s9 }
  0x11   :  { %s1106_s10 = scalar_lea.vmem %s22_s9, 256  ;;  %p1111_p6 = scmp.lt.s32.totalorder %s22_s9, %s22_s9 }
  0x12   :  { %p1107_p5 = scmp.ne.s32.totalorder %s22_s9, %s1106_s10  ;;  %p1112_p7 = scmp.lt.s32.totalorder %s1106_s10, %s1106_s10 }
  0x14   :  { %p1113_p8 = por %p1112_p7, %p1111_p6 }
  0x16   :  { %p1114_p9 = pnand %p1113_p8, %p1107_p5 }
  0x18   :  { %1117 = shalt.err (!%p1114_p9)
}
  0x19   :  { %s1190_s11 = smov 64   ;;  %s1191_s12 = smov 4  }
  0x1a   :  { %27 = dma.hbm_to_vmem [thread:$0]  %s1289_s0, 256, %s22_s9, [#allocation3], %s1190_s11, %s1190_s11, %s1191_s12  }
  0x1b   :  { %s1192_s1 = smov [#allocation7]   ;;  %s1193_s16 = smov [#allocation8]  }
  0x1c   :  { %s45_s15 = sshll.u32 %s1192_s1, 4  ;;  %s57_s17 = sshll.u32 %s1193_s16, 4  ;;  %s46_s15 = int_to_ptr.vmem [resolvable:$true] %s45_s15  ;;  %s58_s17 = int_to_ptr.vmem [resolvable:$true] %s57_s17 }
  0x1d   :  { %s1126_s18 = scalar_lea.vmem %s46_s15, 3072  ;;  %p1131_p11 = scmp.lt.s32.totalorder %s46_s15, %s46_s15 }
  0x1e   :  { %p1127_p10 = scmp.ne.s32.totalorder %s46_s15, %s1126_s18  ;;  %p1132_p12 = scmp.lt.s32.totalorder %s1126_s18, %s1126_s18 }
  0x20   :  { %p1133_p13 = por %p1132_p12, %p1131_p11 }
  0x22   :  { %p1134_p0 = pnand %p1133_p13, %p1127_p10 }
  0x24   :  { %1137 = shalt.err (!%p1134_p0)
}
  0x25   :  { %51 = dma.hbm_to_vmem [thread:$0]  %s1291_s2, 3072, %s46_s15, [#allocation6], %s1190_s11, %s1190_s11, %s1191_s12  }
  0x26   :  { %s1146_s0 = scalar_lea.vmem %s58_s17, 1024  ;;  %p1151_p2 = scmp.lt.s32.totalorder %s58_s17, %s58_s17 }
  0x27   :  { %p1147_p1 = scmp.ne.s32.totalorder %s58_s17, %s1146_s0  ;;  %p1152_p3 = scmp.lt.s32.totalorder %s1146_s0, %s1146_s0 }
  0x29   :  { %p1153_p4 = por %p1152_p3, %p1151_p2 }
  0x2b   :  { %p1154_p5 = pnand %p1153_p4, %p1147_p1 }
  0x2d   :  { %1157 = shalt.err (!%p1154_p5)
}
  0x2e   :  { %63 = dma.hbm_to_vmem [thread:$0]  %s1292_s3, 1024, %s58_s17, [#allocation9], %s1190_s11, %s1190_s11, %s1191_s12  }
  0x2f   :  { %1178 = dma.done.wait [#allocation3], 256  }
  0x30   :  { %1179 = vsyncadd [#allocation3], 4294967040 }
  0x31   :  { %1180 = dma.done.wait [#allocation6], 5120  }
  0x32   :  { %1181 = vsyncadd [#allocation6], 4294962176 }
  0x33   :  { %1182 = dma.done.wait [#allocation9], 1024  }
  0x34   :  { %1183 = vsyncadd [#allocation9], 4294966272  ;;  %v1194_v0 = vmov 0   ;;  %v1020_v1 = vld [vmem:[#allocation5 + $0x74] ss:$8 sps:$4 sm:$0xff]   ;;  %v1049_v15 = vld [vmem:[#allocation7 + $0x68] sm:$0xff]   ;;  %v267_v38 = vlaneseq }
  0x35   :  { %227 = vmatprep.mubr.bf16.mxu0 %v1194_v0  ;;  %v1022_v2 = vld [vmem:[#allocation5 + $0x70] ss:$8 sps:$4 sm:$0xff]   ;;  %195 = vmatprep.subr.bf16.mxu0 %v1020_v1  ;;  %v1023_v3 = vld [vmem:[#allocation5 + $0x64] ss:$8 sps:$4 sm:$0xff]   ;;  %v1025_v4 = vld [vmem:[#allocation5 + $0x60] ss:$8 sps:$4 sm:$0xff]  }
  0x36   :  { %196 = vmatpush1.bf16.msra.mxu0 %v1022_v2  ;;  %v1026_v5 = vld [vmem:[#allocation5 + $0x54] ss:$8 sps:$4 sm:$0xff]   ;;  %v1028_v6 = vld [vmem:[#allocation5 + $0x50] ss:$8 sps:$4 sm:$0xff]   ;;  %v1029_v7 = vld [vmem:[#allocation5 + $0x44] ss:$8 sps:$4 sm:$0xff]  }
  0x37   :  { %197 = vmatprep.subr.bf16.mxu0 %v1023_v3  ;;  %v1031_v8 = vld [vmem:[#allocation5 + $0x40] ss:$8 sps:$4 sm:$0xff]   ;;  %v1032_v9 = vld [vmem:[#allocation5 + $0x34] ss:$8 sps:$4 sm:$0xff]   ;;  %v1034_v12 = vld [vmem:[#allocation5 + $0x30] ss:$8 sps:$4 sm:$0xff]  }
  0x38   :  { %v1046_v10 = vld [vmem:[#allocation7 + $0x78] sm:$0xff]   ;;  %v1047_v11 = vld [vmem:[#allocation7 + $0x70] sm:$0xff]   ;;  %v1035_v13 = vld [vmem:[#allocation5 + $0x24] ss:$8 sps:$4 sm:$0xff]   ;;  %v268_v42 = vshrl.u32 %v267_v38, 7  ;;  %s1195_s25 = smov [#allocation10]  }
  0x39   :  { %930 = vmatprep.subr.bf16.mxu1 %v1046_v10  ;;  %v1037_v14 = vld [vmem:[#allocation5 + $0x20] ss:$8 sps:$4 sm:$0xff]   ;;  %v1038_v16 = vld [vmem:[#allocation5 + $0x14] ss:$8 sps:$4 sm:$0xff]   ;;  %v1040_v18 = vld [vmem:[#allocation5 + $0x10] ss:$8 sps:$4 sm:$0xff]  }
  0x3a   :  { %198 = vmatpush1.bf16.msra.mxu0 %v1025_v4  ;;  %931 = vmatpush3.bf16.msra.mxu1 %v1046_v10  ;;  %v1051_v17 = vld [vmem:[#allocation7 + $0x60] sm:$0xff]   ;;  %v1048_v21 = vld [vmem:[#allocation7 + $0x38] sm:$0xff]   ;;  %v1044_v22 = vld [vmem:[#allocation2] sm:$0xff]   ;;  %vm269_vm0 = vcmp.lt.s32.totalorder %v268_v42, 1  ;;  %vm278_vm1 = vcmp.lt.s32.totalorder %v268_v42, 7  ;;  %s804_s26 = sshll.u32 %s1195_s25, 4  ;;  %s805_s26 = int_to_ptr.vmem [resolvable:$true] %s804_s26 }
  0x3b   :  { %199 = vmatprep.subr.bf16.mxu0 %v1026_v5  ;;  %932 = vmatprep.subr.bf16.mxu1 %v1047_v11  ;;  %v1041_v19 = vld [vmem:[#allocation5 + $0x4] ss:$8 sps:$4 sm:$0xff]   ;;  %v1043_v20 = vld [vmem:[#allocation5] ss:$8 sps:$4 sm:$0xff]   ;;  %v1050_v23 = vld [vmem:[#allocation7 + $0x30] sm:$0xff]   ;;  %p1163_p7 = scmp.lt.s32.totalorder %s805_s26, %s805_s26 }
  0x3c   :  { %v1052_v24 = vld [vmem:[#allocation7 + $0x28] sm:$0xff]   ;;  %v1045_v25 = vld [vmem:[#allocation2 + $0x8] sm:$0xff]   ;;  %v1054_v27 = vld [vmem:[#allocation7 + $0x20] sm:$0xff]  }
  0x3d   :  { %v1053_v26 = vld [vmem:[#allocation7 + $0x58] sm:$0xff]   ;;  %v1055_v28 = vld [vmem:[#allocation7 + $0x50] sm:$0xff]   ;;  %v1057_v30 = vld [vmem:[#allocation7 + $0x48] sm:$0xff]  }
  0x3e   :  { %200 = vmatpush1.bf16.msra.mxu0 %v1028_v6  ;;  %933 = vmatpush3.bf16.msra.mxu1 %v1047_v11  ;;  %v1056_v29 = vld [vmem:[#allocation7 + $0x18] sm:$0xff]   ;;  %v1058_v31 = vld [vmem:[#allocation7 + $0x10] sm:$0xff]   ;;  %v1059_v32 = vld [vmem:[#allocation7 + $0x40] sm:$0xff]  }
  0x3f   :  { %201 = vmatprep.subr.bf16.mxu0 %v1029_v7  ;;  %934 = vmatprep.subr.bf16.mxu1 %v1049_v15  ;;  %v1060_v33 = vld [vmem:[#allocation7 + $0x8] sm:$0xff]   ;;  %v1061_v34 = vld [vmem:[#allocation7] sm:$0xff]   ;;  %v1062_v35 = vld [vmem:[#allocation7 + $0xb8] sm:$0xff]  }
  0x40   :  { %v836_v36 = vld [vmem:[%s1293_s4] ss:$0 sm:$0xff]  ;;  %v1066_v10 = vld [vmem:[#allocation7 + $0x98] sm:$0xff]  }
  0x41   :  { %v1063_v3 = vld [vmem:[#allocation7 + $0xb0] sm:$0xff]  }
  0x42   :  { %202 = vmatpush1.bf16.msra.mxu0 %v1031_v8  ;;  %935 = vmatpush3.bf16.msra.mxu1 %v1049_v15  ;;  %v1064_v8 = vld [vmem:[#allocation7 + $0xa8] sm:$0xff]   ;;  %v1067_v11 = vld [vmem:[#allocation7 + $0x90] sm:$0xff]  }
  0x43   :  { %203 = vmatprep.subr.bf16.mxu0 %v1032_v9  ;;  %936 = vmatprep.subr.bf16.mxu1 %v1051_v17  ;;  %v1065_v9 = vld [vmem:[#allocation7 + $0xa0] sm:$0xff]  }
  0x46   :  { %204 = vmatpush1.bf16.msra.mxu0 %v1034_v12  ;;  %937 = vmatpush3.bf16.msra.mxu1 %v1051_v17  ;;  %v1068_v12 = vld [vmem:[#allocation7 + $0x88] sm:$0xff]  }
  0x47   :  { %205 = vmatprep.subr.bf16.mxu0 %v1035_v13  ;;  %938 = vmatprep.subr.bf16.mxu1 %v1053_v26  ;;  %v1069_v13 = vld [vmem:[#allocation7 + $0x80] sm:$0xff]  }
  0x4a   :  { %206 = vmatpush1.bf16.msra.mxu0 %v1037_v14  ;;  %939 = vmatpush3.bf16.msra.mxu1 %v1053_v26  ;;  %v1077_v26 = vld [vmem:[#allocation8] sm:$0xff]  }
  0x4b   :  { %207 = vmatprep.subr.bf16.mxu0 %v1038_v16  ;;  %940 = vmatprep.subr.bf16.mxu1 %v1055_v28 }
  0x4e   :  { %208 = vmatpush1.bf16.msra.mxu0 %v1040_v18  ;;  %941 = vmatpush3.bf16.msra.mxu1 %v1055_v28 }
  0x4f   :  { %209 = vmatprep.subr.bf16.mxu0 %v1041_v19  ;;  %942 = vmatprep.subr.bf16.mxu1 %v1057_v30  ;;  %v1070_v19 = vld [vmem:[#allocation8 + $0x38] sm:$0xff]  }
  0x52   :  { %210 = vmatpush1.bf16.msra.mxu0 %v1043_v20  ;;  %943 = vmatpush3.bf16.msra.mxu1 %v1057_v30  ;;  %v1071_v20 = vld [vmem:[#allocation8 + $0x30] sm:$0xff]  }
  0x53   :  { %950 = vmatprep.subr.bf16.mxu0 %v1048_v21  ;;  %944 = vmatprep.subr.bf16.mxu1 %v1059_v32 }
  0x55   :  { %228 = vmatmul.mubr.bf16.vlgmr.msra.gmra.mxu0 %v1044_v22  ;;  %v1073_v22 = vld [vmem:[#allocation8 + $0x20] sm:$0xff]  }
  0x56   :  { %237 = vmatprep.mubr.bf16.mxu0 %v1194_v0  ;;  %951 = vmatpush3.bf16.msra.mxu0 %v1048_v21  ;;  %v1072_v21 = vld [vmem:[#allocation8 + $0x28] sm:$0xff]  }
  0x57   :  { %952 = vmatprep.subr.bf16.mxu0 %v1050_v23  ;;  %945 = vmatpush3.bf16.msra.mxu1 %v1059_v32 }
  0x58   :  { %970 = vmatprep.subr.bf16.mxu1 %v1062_v35 }
  0x5a   :  { %953 = vmatpush3.bf16.msra.mxu0 %v1050_v23  ;;  %v1074_v23 = vld [vmem:[#allocation8 + $0x18] sm:$0xff]  }
  0x5b   :  { %954 = vmatprep.subr.bf16.mxu0 %v1052_v24 }
  0x5d   :  { %238 = vmatmul.mubr.bf16.gmra.mxu0 %v1045_v25  ;;  %v1076_v25 = vld [vmem:[#allocation8 + $0x8] sm:$0xff]  }
  0x5e   :  { %955 = vmatpush3.bf16.msra.mxu0 %v1052_v24  ;;  %v1075_v24 = vld [vmem:[#allocation8 + $0x10] sm:$0xff]  }
  0x5f   :  { %956 = vmatprep.subr.bf16.mxu0 %v1054_v27 }
  0x62   :  { %957 = vmatpush3.bf16.msra.mxu0 %v1054_v27 }
  0x63   :  { %958 = vmatprep.subr.bf16.mxu0 %v1056_v29 }
  0x66   :  { %959 = vmatpush3.bf16.msra.mxu0 %v1056_v29 }
  0x67   :  { %960 = vmatprep.subr.bf16.mxu0 %v1058_v31 }
  0x6a   :  { %961 = vmatpush3.bf16.msra.mxu0 %v1058_v31 }
  0x6b   :  { %962 = vmatprep.subr.bf16.mxu0 %v1060_v33 }
  0x6e   :  { %963 = vmatpush3.bf16.msra.mxu0 %v1060_v33 }
  0x6f   :  { %964 = vmatprep.subr.bf16.mxu0 %v1061_v34 }
  0x72   :  { %965 = vmatpush3.bf16.msra.mxu0 %v1061_v34 }
  0x73   :  { %990 = vmatprep.subr.bf16.mxu0 %v1070_v19 }
 0x115   :  { %v229_v37 = vpop.f32.mrf.mxu0 }
 0x116   :  { %v255_v39 = vadd.f32 %v836_v36, %v229_v37 }
 0x117   :  { %v1260_v40 = vpop.f32.mrf.mxu0 }
 0x118   :  { %v259_v43 = vmax.f32 %v255_v39, 0.0 }
 0x119   :  { %v233_v41 = vpop.f32.mrf.mxu0 }
 0x11a   :  { %v256_v44 = vadd.f32 %v836_v36, %v233_v41  ;;  %v263_v48 = vrot.slane %v259_v43, 7  ;;  %v274_v58 = vrot.slane %v259_v43, 1 }
 0x11b   :  { %v1262_v45 = vpop.f32.mrf.mxu0 }
 0x11c   :  { %v260_v46 = vmax.f32 %v256_v44, 0.0 }
 0x11d   :  { %v239_v47 = vpop.f32.mrf.mxu0 }
 0x11e   :  { %v265_v49 = vrot.slane %v260_v46, 7  ;;  %v257_v50 = vadd.f32 %v836_v36, %v239_v47  ;;  %v301_v51 = vpack.c.bf16 %v260_v46, %v259_v43  ;;  %v276_v53 = vrot.slane %v260_v46, 1  ;;  %v861_v47 = vld [vmem:[%s1294_s5] ss:$0 sm:$0xff] }
 0x11f   :  { %v1264_v52 = vpop.f32.mrf.mxu0 }
 0x120   :  { %946 = vmatprep.mubr.bf16.mxu1 %v301_v51  ;;  %v270_v54 = vsel %vm269_vm0, %v263_v48, %v265_v49  ;;  %v272_v55 = vsel %vm269_vm0, %v265_v49, %v263_v48  ;;  %v261_v59 = vmax.f32 %v257_v50, 0.0  ;;  %v279_v62 = vsel %vm278_vm1, %v274_v58, %v276_v53 }
 0x121   :  { %v243_v56 = vpop.f32.mrf.mxu0  ;;  %v283_v57 = vpack.c.bf16 %v270_v54, %v272_v55  ;;  %v281_v63 = vsel %vm278_vm1, %v276_v53, %v274_v58 }
 0x122   :  { %v258_v60 = vadd.f32 %v836_v36, %v243_v56  ;;  %v264_v0 = vrot.slane %v261_v59, 7  ;;  %v514_v4 = vpack.c.bf16 %v281_v63, %v279_v62  ;;  %v275_v15 = vrot.slane %v261_v59, 1 }
 0x123   :  { %966 = vmatprep.mubr.bf16.mxu0 %v283_v57  ;;  %v245_v28 = vpop.f32.mrf.mxu0 }
 0x124   :  { %v262_v61 = vmax.f32 %v258_v60, 0.0 }
 0x126   :  { %v266_v1 = vrot.slane %v262_v61, 7  ;;  %v302_v2 = vpack.c.bf16 %v262_v61, %v261_v59  ;;  %v277_v14 = vrot.slane %v262_v61, 1 }
 0x128   :  { %947 = vmatmul.mubr.bf16.vlgmr.msra.gmra.mxu1 %v302_v2  ;;  %v271_v5 = vsel %vm269_vm0, %v264_v0, %v266_v1  ;;  %v273_v6 = vsel %vm269_vm0, %v266_v1, %v264_v0  ;;  %v280_v16 = vsel %vm278_vm1, %v275_v15, %v277_v14  ;;  %v282_v17 = vsel %vm278_vm1, %v277_v14, %v275_v15  ;;  %v870_v0 = vld [vmem:[%s1295_s6] ss:$0 sm:$0xff]  ;;  %s1158_s6 = scalar_lea.vmem %s805_s26, 256 }
 0x129   :  { %971 = vmatpush3.bf16.msra.mxu1 %v1062_v35  ;;  %986 = vmatprep.mubr.bf16.mxu1 %v514_v4  ;;  %v284_v7 = vpack.c.bf16 %v271_v5, %v273_v6  ;;  %v515_v18 = vpack.c.bf16 %v282_v17, %v280_v16  ;;  %p1159_p6 = scmp.ne.s32.totalorder %s805_s26, %s1158_s6  ;;  %p1164_p8 = scmp.lt.s32.totalorder %s1158_s6, %s1158_s6 }
 0x12a   :  { %972 = vmatprep.subr.bf16.mxu1 %v1063_v3 }
 0x12b   :  { %967 = vmatmul.mubr.bf16.vlgmr.msra.gmra.mxu0 %v284_v7  ;;  %p1165_p9 = por %p1164_p8, %p1163_p7 }
 0x12c   :  { %991 = vmatpush3.bf16.msra.mxu0 %v1070_v19 }
 0x12d   :  { %973 = vmatpush3.bf16.msra.mxu1 %v1063_v3  ;;  %992 = vmatprep.subr.bf16.mxu0 %v1071_v20  ;;  %p1166_p10 = pnand %p1165_p9, %p1159_p6 }
 0x12e   :  { %974 = vmatprep.subr.bf16.mxu1 %v1064_v8 }
 0x130   :  { %993 = vmatpush3.bf16.msra.mxu0 %v1071_v20 }
 0x131   :  { %975 = vmatpush3.bf16.msra.mxu1 %v1064_v8  ;;  %994 = vmatprep.subr.bf16.mxu0 %v1072_v21 }
 0x132   :  { %976 = vmatprep.subr.bf16.mxu1 %v1065_v9 }
 0x134   :  { %995 = vmatpush3.bf16.msra.mxu0 %v1072_v21 }
 0x135   :  { %977 = vmatpush3.bf16.msra.mxu1 %v1065_v9  ;;  %996 = vmatprep.subr.bf16.mxu0 %v1073_v22 }
 0x136   :  { %978 = vmatprep.subr.bf16.mxu1 %v1066_v10 }
 0x138   :  { %997 = vmatpush3.bf16.msra.mxu0 %v1073_v22 }
 0x139   :  { %979 = vmatpush3.bf16.msra.mxu1 %v1066_v10  ;;  %998 = vmatprep.subr.bf16.mxu0 %v1074_v23 }
 0x13a   :  { %980 = vmatprep.subr.bf16.mxu1 %v1067_v11 }
 0x13c   :  { %999 = vmatpush3.bf16.msra.mxu0 %v1074_v23 }
 0x13d   :  { %981 = vmatpush3.bf16.msra.mxu1 %v1067_v11  ;;  %1000 = vmatprep.subr.bf16.mxu0 %v1075_v24 }
 0x13e   :  { %982 = vmatprep.subr.bf16.mxu1 %v1068_v12 }
 0x140   :  { %1001 = vmatpush3.bf16.msra.mxu0 %v1075_v24 }
 0x141   :  { %983 = vmatpush3.bf16.msra.mxu1 %v1068_v12  ;;  %1002 = vmatprep.subr.bf16.mxu0 %v1076_v25 }
 0x142   :  { %984 = vmatprep.subr.bf16.mxu1 %v1069_v13 }
 0x144   :  { %1003 = vmatpush3.bf16.msra.mxu0 %v1076_v25 }
 0x145   :  { %985 = vmatpush3.bf16.msra.mxu1 %v1069_v13  ;;  %1004 = vmatprep.subr.bf16.mxu0 %v1077_v26 }
 0x148   :  { %987 = vmatmul.mubr.bf16.vlgmr.msra.gmra.mxu1 %v515_v18  ;;  %1005 = vmatpush3.bf16.msra.mxu0 %v1077_v26 }
 0x1e8   :  { %v948_v27 = vpop.f32.mrf.mxu1 }
 0x1ea   :  { %v402_v29 = vpop.f32.mrf.mxu1 }
 0x1eb   :  { %v968_v30 = vpop.f32.mrf.mxu0 }
 0x1ec   :  { %v949_v31 = vpop.f32.mrf.mxu1  ;;  %v508_v37 = vadd.f32 %v968_v30, %v948_v27 }
 0x1ed   :  { %v499_v32 = vpop.f32.mrf.mxu0 }
 0x1ee   :  { %v405_v33 = vpop.f32.mrf.mxu1  ;;  %v500_v36 = vadd.f32 %v499_v32, %v402_v29 }
 0x1ef   :  { %v969_v34 = vpop.f32.mrf.mxu0 }
 0x1f0   :  { %v511_v41 = vadd.f32 %v969_v34, %v949_v31 }
 0x1f1   :  { %v502_v38 = vpop.f32.mrf.mxu0 }
 0x1f2   :  { %v503_v46 = vadd.f32 %v502_v38, %v405_v33 }
 0x208   :  { %v988_v35 = vpop.f32.mrf.mxu1 }
 0x209   :  { %v632_v43 = vadd.f32 %v988_v35, %v508_v37 }
 0x20a   :  { %v615_v39 = vpop.f32.mrf.mxu1 }
 0x20b   :  { %v630_v42 = vadd.f32 %v615_v39, %v500_v36  ;;  %v643_v54 = vadd.f32 %v861_v47, %v632_v43 }
 0x20c   :  { %v989_v44 = vpop.f32.mrf.mxu1 }
 0x20d   :  { %v633_v48 = vadd.f32 %v989_v44, %v511_v41  ;;  %v641_v50 = vadd.f32 %v861_v47, %v630_v42  ;;  %v647_v59 = vmax.f32 %v643_v54, 0.0 }
 0x20e   :  { %v618_v49 = vpop.f32.mrf.mxu1 }
 0x20f   :  { %v644_v51 = vadd.f32 %v861_v47, %v633_v48  ;;  %v631_v53 = vadd.f32 %v618_v49, %v503_v46  ;;  %v645_v57 = vmax.f32 %v641_v50, 0.0 }
 0x211   :  { %v642_v55 = vadd.f32 %v861_v47, %v631_v53  ;;  %v648_v56 = vmax.f32 %v644_v51, 0.0 }
 0x213   :  { %v646_v58 = vmax.f32 %v642_v55, 0.0  ;;  %v650_v61 = vpack.c.bf16 %v648_v56, %v647_v59 }
 0x215   :  { %v649_v60 = vpack.c.bf16 %v646_v58, %v645_v57 }
 0x217   :  { %1006 = vmatprep.mubr.bf16.mxu0 %v649_v60 }
 0x218   :  { %1007 = vmatmul.mubr.bf16.vlgmr.msra.gmra.mxu0 %v650_v61 }
 0x2d8   :  { %v1008_v62 = vpop.f32.mrf.mxu0 }
 0x2d9   :  { %v758_v63 = vadd.f32 %v1008_v62, %v1264_v52 }
 0x2da   :  { %v749_v1 = vpop.f32.mrf.mxu0 }
 0x2db   :  { %v750_v2 = vadd.f32 %v749_v1, %v1260_v40  ;;  %v773_v4 = vadd.f32 %v870_v0, %v758_v63 }
 0x2dc   :  { %v1009_v3 = vpop.f32.mrf.mxu0 }
 0x2dd   :  { %v761_v5 = vadd.f32 %v1009_v3, %v245_v28  ;;  %v771_v7 = vadd.f32 %v870_v0, %v750_v2  ;;  %v777_v10 = vmax.f32 %v773_v4, 0.0 }
 0x2de   :  { %v752_v6 = vpop.f32.mrf.mxu0 }
 0x2df   :  { %v774_v8 = vadd.f32 %v870_v0, %v761_v5  ;;  %v753_v9 = vadd.f32 %v752_v6, %v1262_v45  ;;  %v775_v52 = vmax.f32 %v771_v7, 0.0 }
 0x2e1   :  { %v778_v11 = vmax.f32 %v774_v8, 0.0  ;;  %v772_v12 = vadd.f32 %v870_v0, %v753_v9 }
 0x2e3   :  { %v887_v13 = vpack.c.bf16 %v778_v11, %v777_v10  ;;  %v776_v14 = vmax.f32 %v772_v12, 0.0 }
 0x2e5   :  { %889 = vst [vmem:[#allocation10 + $0x8] sm:$0xff] %v887_v13   ;;  %v882_v15 = vpack.c.bf16 %v776_v14, %v775_v52 }
 0x2e7   :  { %883 = vst [vmem:[#allocation10] sm:$0xff] %v882_v15  }
 0x2e8   :  { %1169 = shalt.err (!%p1166_p10)
}
 0x2e9   :  { %810 = dma.vmem_to_hbm [thread:$0]  %s805_s26, 256, %s1296_s7, [#allocation4], %s1190_s11, %s1190_s11, %s1191_s12  }
 0x2ea   :  { %1184 = dma.done.wait [#allocation4], 256  }
 0x2eb   :  { %1185 = vsyncadd [#allocation4], 4294967040 }
 0x2ec   :  { %814 = vsyncpa [#allocation3], 1 }
 0x2ed   :  { %815 = vsyncpa [#allocation6], 1 }
 0x2ee   :  { %816 = vsyncpa [#allocation9], 1 }
 0x2ef   :  { %817 = vsyncpa [#allocation4], 1 }

// kernel: tpu_custom_call.1
= control target key start
LH: loop header
LB: loop body
LE: loop exit
PB: predicated region body
PF: predicated region fallthrough
CT: control target
= control target key end

     0   :  { %12 = vsyncpa [#allocation3], 0  ;;  %s1289_s0 = inlined_call_operand.hbm [shape: bf16[32,128], index: 0, kind: input, shape index: {}]   ;;  %s1290_s1 = inlined_call_operand.hbm [shape: bf16[128,256], index: 1, kind: input, shape index: {}]   ;;  %s1291_s2 = inlined_call_operand.hbm [shape: bf16[3,128,128], index: 2, kind: input, shape index: {}]   ;;  %s1292_s3 = inlined_call_operand.hbm [shape: bf16[128,128], index: 3, kind: input, shape index: {}]   ;;  %s1293_s4 = inlined_call_operand.vmem [shape: f32[1,128], index: 4, kind: input, shape index: {}]   ;;  %s1294_s5 = inlined_call_operand.vmem [shape: f32[1,128], index: 5, kind: input, shape index: {}]   ;;  %s1295_s6 = inlined_call_operand.vmem [shape: f32[1,128], index: 6, kind: input, shape index: {}]   ;;  %s1296_s7 = inlined_call_operand.hbm [shape: bf16[32,128], index: 7, kind: output, shape index: {}]  }
   0x1   :  { %13 = vsyncpa [#allocation6], 0 }
   0x2   :  { %14 = vsyncpa [#allocation9], 0 }
   0x3   :  { %15 = vsyncpa [#allocation4], 0  ;;  %s1186_s24 = smov [#allocation5]  }
   0x4   :  { %s33_s25 = sshll.u32 %s1186_s24, 4  ;;  %s34_s25 = int_to_ptr.vmem [resolvable:$true] %s33_s25 }
   0x5   :  { %s1086_s26 = scalar_lea.vmem %s34_s25, 2048  ;;  %p1091_p1 = scmp.lt.s32.totalorder %s34_s25, %s34_s25 }
   0x6   :  { %p1087_p0 = scmp.ne.s32.totalorder %s34_s25, %s1086_s26  ;;  %p1092_p2 = scmp.lt.s32.totalorder %s1086_s26, %s1086_s26 }
   0x8   :  { %p1093_p3 = por %p1092_p2, %p1091_p1 }
   0xa   :  { %p1094_p4 = pnand %p1093_p3, %p1087_p0 }
   0xc   :  { %1097 = shalt.err (!%p1094_p4)
}
   0xd   :  { %s1187_s27 = smov 128   ;;  %s1188_s28 = smov 8  }
   0xe   :  { %39 = dma.hbm_to_vmem [thread:$0]  %s1290_s1, 2048, %s34_s25, [#allocation6], %s1187_s27, %s1187_s27, %s1188_s28  }
   0xf   :  { %s1189_s8 = smov [#allocation2]  }
  0x10   :  { %s21_s9 = sshll.u32 %s1189_s8, 4  ;;  %s22_s9 = int_to_ptr.vmem [resolvable:$true] %s21_s9 }
  0x11   :  { %s1106_s10 = scalar_lea.vmem %s22_s9, 256  ;;  %p1111_p6 = scmp.lt.s32.totalorder %s22_s9, %s22_s9 }
  0x12   :  { %p1107_p5 = scmp.ne.s32.totalorder %s22_s9, %s1106_s10  ;;  %p1112_p7 = scmp.lt.s32.totalorder %s1106_s10, %s1106_s10 }
  0x14   :  { %p1113_p8 = por %p1112_p7, %p1111_p6 }
  0x16   :  { %p1114_p9 = pnand %p1113_p8, %p1107_p5 }
  0x18   :  { %1117 = shalt.err (!%p1114_p9)
}
  0x19   :  { %s1190_s11 = smov 64   ;;  %s1191_s12 = smov 4  }
  0x1a   :  { %27 = dma.hbm_to_vmem [thread:$0]  %s1289_s0, 256, %s22_s9, [#allocation3], %s1190_s11, %s1190_s11, %s1191_s12  }
  0x1b   :  { %s1192_s1 = smov [#allocation7]   ;;  %s1193_s16 = smov [#allocation8]  }
  0x1c   :  { %s45_s15 = sshll.u32 %s1192_s1, 4  ;;  %s57_s17 = sshll.u32 %s1193_s16, 4  ;;  %s46_s15 = int_to_ptr.vmem [resolvable:$true] %s45_s15  ;;  %s58_s17 = int_to_ptr.vmem [resolvable:$true] %s57_s17 }
  0x1d   :  { %s1126_s18 = scalar_lea.vmem %s46_s15, 3072  ;;  %p1131_p11 = scmp.lt.s32.totalorder %s46_s15, %s46_s15 }
  0x1e   :  { %p1127_p10 = scmp.ne.s32.totalorder %s46_s15, %s1126_s18  ;;  %p1132_p12 = scmp.lt.s32.totalorder %s1126_s18, %s1126_s18 }
  0x20   :  { %p1133_p13 = por %p1132_p12, %p1131_p11 }
  0x22   :  { %p1134_p0 = pnand %p1133_p13, %p1127_p10 }
  0x24   :  { %1137 = shalt.err (!%p1134_p0)
}
  0x25   :  { %51 = dma.hbm_to_vmem [thread:$0]  %s1291_s2, 3072, %s46_s15, [#allocation6], %s1190_s11, %s1190_s11, %s1191_s12  }
  0x26   :  { %s1146_s0 = scalar_lea.vmem %s58_s17, 1024  ;;  %p1151_p2 = scmp.lt.s32.totalorder %s58_s17, %s58_s17 }
  0x27   :  { %p1147_p1 = scmp.ne.s32.totalorder %s58_s17, %s1146_s0  ;;  %p1152_p3 = scmp.lt.s32.totalorder %s1146_s0, %s1146_s0 }
  0x29   :  { %p1153_p4 = por %p1152_p3, %p1151_p2 }
  0x2b   :  { %p1154_p5 = pnand %p1153_p4, %p1147_p1 }
  0x2d   :  { %1157 = shalt.err (!%p1154_p5)
}
  0x2e   :  { %63 = dma.hbm_to_vmem [thread:$0]  %s1292_s3, 1024, %s58_s17, [#allocation9], %s1190_s11, %s1190_s11, %s1191_s12  }
  0x2f   :  { %1178 = dma.done.wait [#allocation3], 256  }
  0x30   :  { %1179 = vsyncadd [#allocation3], 4294967040 }
  0x31   :  { %1180 = dma.done.wait [#allocation6], 5120  }
  0x32   :  { %1181 = vsyncadd [#allocation6], 4294962176 }
  0x33   :  { %1182 = dma.done.wait [#allocation9], 1024  }
  0x34   :  { %1183 = vsyncadd [#allocation9], 4294966272  ;;  %v1194_v0 = vmov 0   ;;  %v1020_v1 = vld [vmem:[#allocation5 + $0x74] ss:$8 sps:$4 sm:$0xff]   ;;  %v1049_v15 = vld [vmem:[#allocation7 + $0x68] sm:$0xff]   ;;  %v267_v38 = vlaneseq }
  0x35   :  { %227 = vmatprep.mubr.bf16.mxu0 %v1194_v0  ;;  %v1022_v2 = vld [vmem:[#allocation5 + $0x70] ss:$8 sps:$4 sm:$0xff]   ;;  %195 = vmatprep.subr.bf16.mxu0 %v1020_v1  ;;  %v1023_v3 = vld [vmem:[#allocation5 + $0x64] ss:$8 sps:$4 sm:$0xff]   ;;  %v1025_v4 = vld [vmem:[#allocation5 + $0x60] ss:$8 sps:$4 sm:$0xff]  }
  0x36   :  { %196 = vmatpush1.bf16.msra.mxu0 %v1022_v2  ;;  %v1026_v5 = vld [vmem:[#allocation5 + $0x54] ss:$8 sps:$4 sm:$0xff]   ;;  %v1028_v6 = vld [vmem:[#allocation5 + $0x50] ss:$8 sps:$4 sm:$0xff]   ;;  %v1029_v7 = vld [vmem:[#allocation5 + $0x44] ss:$8 sps:$4 sm:$0xff]  }
  0x37   :  { %197 = vmatprep.subr.bf16.mxu0 %v1023_v3  ;;  %v1031_v8 = vld [vmem:[#allocation5 + $0x40] ss:$8 sps:$4 sm:$0xff]   ;;  %v1032_v9 = vld [vmem:[#allocation5 + $0x34] ss:$8 sps:$4 sm:$0xff]   ;;  %v1034_v12 = vld [vmem:[#allocation5 + $0x30] ss:$8 sps:$4 sm:$0xff]  }
  0x38   :  { %v1046_v10 = vld [vmem:[#allocation7 + $0x78] sm:$0xff]   ;;  %v1047_v11 = vld [vmem:[#allocation7 + $0x70] sm:$0xff]   ;;  %v1035_v13 = vld [vmem:[#allocation5 + $0x24] ss:$8 sps:$4 sm:$0xff]   ;;  %v268_v42 = vshrl.u32 %v267_v38, 7  ;;  %s1195_s25 = smov [#allocation10]  }
  0x39   :  { %930 = vmatprep.subr.bf16.mxu1 %v1046_v10  ;;  %v1037_v14 = vld [vmem:[#allocation5 + $0x20] ss:$8 sps:$4 sm:$0xff]   ;;  %v1038_v16 = vld [vmem:[#allocation5 + $0x14] ss:$8 sps:$4 sm:$0xff]   ;;  %v1040_v18 = vld [vmem:[#allocation5 + $0x10] ss:$8 sps:$4 sm:$0xff]  }
  0x3a   :  { %198 = vmatpush1.bf16.msra.mxu0 %v1025_v4  ;;  %931 = vmatpush3.bf16.msra.mxu1 %v1046_v10  ;;  %v1051_v17 = vld [vmem:[#allocation7 + $0x60] sm:$0xff]   ;;  %v1048_v21 = vld [vmem:[#allocation7 + $0x38] sm:$0xff]   ;;  %v1044_v22 = vld [vmem:[#allocation2] sm:$0xff]   ;;  %vm269_vm0 = vcmp.lt.s32.totalorder %v268_v42, 1  ;;  %vm278_vm1 = vcmp.lt.s32.totalorder %v268_v42, 7  ;;  %s804_s26 = sshll.u32 %s1195_s25, 4  ;;  %s805_s26 = int_to_ptr.vmem [resolvable:$true] %s804_s26 }
  0x3b   :  { %199 = vmatprep.subr.bf16.mxu0 %v1026_v5  ;;  %932 = vmatprep.subr.bf16.mxu1 %v1047_v11  ;;  %v1041_v19 = vld [vmem:[#allocation5 + $0x4] ss:$8 sps:$4 sm:$0xff]   ;;  %v1043_v20 = vld [vmem:[#allocation5] ss:$8 sps:$4 sm:$0xff]   ;;  %v1050_v23 = vld [vmem:[#allocation7 + $0x30] sm:$0xff]   ;;  %p1163_p7 = scmp.lt.s32.totalorder %s805_s26, %s805_s26 }
  0x3c   :  { %v1052_v24 = vld [vmem:[#allocation7 + $0x28] sm:$0xff]   ;;  %v1045_v25 = vld [vmem:[#allocation2 + $0x8] sm:$0xff]   ;;  %v1054_v27 = vld [vmem:[#allocation7 + $0x20] sm:$0xff]  }
  0x3d   :  { %v1053_v26 = vld [vmem:[#allocation7 + $0x58] sm:$0xff]   ;;  %v1055_v28 = vld [vmem:[#allocation7 + $0x50] sm:$0xff]   ;;  %v1057_v30 = vld [vmem:[#allocation7 + $0x48] sm:$0xff]  }
  0x3e   :  { %200 = vmatpush1.bf16.msra.mxu0 %v1028_v6  ;;  %933 = vmatpush3.bf16.msra.mxu1 %v1047_v11  ;;  %v1056_v29 = vld [vmem:[#allocation7 + $0x18] sm:$0xff]   ;;  %v1058_v31 = vld [vmem:[#allocation7 + $0x10] sm:$0xff]   ;;  %v1059_v32 = vld [vmem:[#allocation7 + $0x40] sm:$0xff]  }
  0x3f   :  { %201 = vmatprep.subr.bf16.mxu0 %v1029_v7  ;;  %934 = vmatprep.subr.bf16.mxu1 %v1049_v15  ;;  %v1060_v33 = vld [vmem:[#allocation7 + $0x8] sm:$0xff]   ;;  %v1061_v34 = vld [vmem:[#allocation7] sm:$0xff]   ;;  %v1062_v35 = vld [vmem:[#allocation7 + $0xb8] sm:$0xff]  }
  0x40   :  { %v836_v36 = vld [vmem:[%s1293_s4] ss:$0 sm:$0xff]  ;;  %v1066_v10 = vld [vmem:[#allocation7 + $0x98] sm:$0xff]  }
  0x41   :  { %v1063_v3 = vld [vmem:[#allocation7 + $0xb0] sm:$0xff]  }
  0x42   :  { %202 = vmatpush1.bf16.msra.mxu0 %v1031_v8  ;;  %935 = vmatpush3.bf16.msra.mxu1 %v1049_v15  ;;  %v1064_v8 = vld [vmem:[#allocation7 + $0xa8] sm:$0xff]   ;;  %v1067_v11 = vld [vmem:[#allocation7 + $0x90] sm:$0xff]  }
  0x43   :  { %203 = vmatprep.subr.bf16.mxu0 %v1032_v9  ;;  %936 = vmatprep.subr.bf16.mxu1 %v1051_v17  ;;  %v1065_v9 = vld [vmem:[#allocation7 + $0xa0] sm:$0xff]  }
  0x46   :  { %204 = vmatpush1.bf16.msra.mxu0 %v1034_v12  ;;  %937 = vmatpush3.bf16.msra.mxu1 %v1051_v17  ;;  %v1068_v12 = vld [vmem:[#allocation7 + $0x88] sm:$0xff]  }
  0x47   :  { %205 = vmatprep.subr.bf16.mxu0 %v1035_v13  ;;  %938 = vmatprep.subr.bf16.mxu1 %v1053_v26  ;;  %v1069_v13 = vld [vmem:[#allocation7 + $0x80] sm:$0xff]  }
  0x4a   :  { %206 = vmatpush1.bf16.msra.mxu0 %v1037_v14  ;;  %939 = vmatpush3.bf16.msra.mxu1 %v1053_v26  ;;  %v1077_v26 = vld [vmem:[#allocation8] sm:$0xff]  }
  0x4b   :  { %207 = vmatprep.subr.bf16.mxu0 %v1038_v16  ;;  %940 = vmatprep.subr.bf16.mxu1 %v1055_v28 }
  0x4e   :  { %208 = vmatpush1.bf16.msra.mxu0 %v1040_v18  ;;  %941 = vmatpush3.bf16.msra.mxu1 %v1055_v28 }
  0x4f   :  { %209 = vmatprep.subr.bf16.mxu0 %v1041_v19  ;;  %942 = vmatprep.subr.bf16.mxu1 %v1057_v30  ;;  %v1070_v19 = vld [vmem:[#allocation8 + $0x38] sm:$0xff]  }
  0x52   :  { %210 = vmatpush1.bf16.msra.mxu0 %v1043_v20  ;;  %943 = vmatpush3.bf16.msra.mxu1 %v1057_v30  ;;  %v1071_v20 = vld [vmem:[#allocation8 + $0x30] sm:$0xff]  }
  0x53   :  { %950 = vmatprep.subr.bf16.mxu0 %v1048_v21  ;;  %944 = vmatprep.subr.bf16.mxu1 %v1059_v32 }
  0x55   :  { %228 = vmatmul.mubr.bf16.vlgmr.msra.gmra.mxu0 %v1044_v22  ;;  %v1073_v22 = vld [vmem:[#allocation8 + $0x20] sm:$0xff]  }
  0x56   :  { %237 = vmatprep.mubr.bf16.mxu0 %v1194_v0  ;;  %951 = vmatpush3.bf16.msra.mxu0 %v1048_v21  ;;  %v1072_v21 = vld [vmem:[#allocation8 + $0x28] sm:$0xff]  }
  0x57   :  { %952 = vmatprep.subr.bf16.mxu0 %v1050_v23  ;;  %945 = vmatpush3.bf16.msra.mxu1 %v1059_v32 }
  0x58   :  { %970 = vmatprep.subr.bf16.mxu1 %v1062_v35 }
  0x5a   :  { %953 = vmatpush3.bf16.msra.mxu0 %v1050_v23  ;;  %v1074_v23 = vld [vmem:[#allocation8 + $0x18] sm:$0xff]  }
  0x5b   :  { %954 = vmatprep.subr.bf16.mxu0 %v1052_v24 }
  0x5d   :  { %238 = vmatmul.mubr.bf16.gmra.mxu0 %v1045_v25  ;;  %v1076_v25 = vld [vmem:[#allocation8 + $0x8] sm:$0xff]  }
  0x5e   :  { %955 = vmatpush3.bf16.msra.mxu0 %v1052_v24  ;;  %v1075_v24 = vld [vmem:[#allocation8 + $0x10] sm:$0xff]  }
  0x5f   :  { %956 = vmatprep.subr.bf16.mxu0 %v1054_v27 }
  0x62   :  { %957 = vmatpush3.bf16.msra.mxu0 %v1054_v27 }
  0x63   :  { %958 = vmatprep.subr.bf16.mxu0 %v1056_v29 }
  0x66   :  { %959 = vmatpush3.bf16.msra.mxu0 %v1056_v29 }
  0x67   :  { %960 = vmatprep.subr.bf16.mxu0 %v1058_v31 }
  0x6a   :  { %961 = vmatpush3.bf16.msra.mxu0 %v1058_v31 }
  0x6b   :  { %962 = vmatprep.subr.bf16.mxu0 %v1060_v33 }
  0x6e   :  { %963 = vmatpush3.bf16.msra.mxu0 %v1060_v33 }
  0x6f   :  { %964 = vmatprep.subr.bf16.mxu0 %v1061_v34 }
  0x72   :  { %965 = vmatpush3.bf16.msra.mxu0 %v1061_v34 }
  0x73   :  { %990 = vmatprep.subr.bf16.mxu0 %v1070_v19 }
 0x115   :  { %v229_v37 = vpop.f32.mrf.mxu0 }
 0x116   :  { %v255_v39 = vadd.f32 %v836_v36, %v229_v37 }
 0x117   :  { %v1260_v40 = vpop.f32.mrf.mxu0 }
 0x118   :  { %v259_v43 = vmax.f32 %v255_v39, 0.0 }
 0x119   :  { %v233_v41 = vpop.f32.mrf.mxu0 }
 0x11a   :  { %v256_v44 = vadd.f32 %v836_v36, %v233_v41  ;;  %v263_v48 = vrot.slane %v259_v43, 7  ;;  %v274_v58 = vrot.slane %v259_v43, 1 }
 0x11b   :  { %v1262_v45 = vpop.f32.mrf.mxu0 }
 0x11c   :  { %v260_v46 = vmax.f32 %v256_v44, 0.0 }
 0x11d   :  { %v239_v47 = vpop.f32.mrf.mxu0 }
 0x11e   :  { %v265_v49 = vrot.slane %v260_v46, 7  ;;  %v257_v50 = vadd.f32 %v836_v36, %v239_v47  ;;  %v301_v51 = vpack.c.bf16 %v260_v46, %v259_v43  ;;  %v276_v53 = vrot.slane %v260_v46, 1  ;;  %v861_v47 = vld [vmem:[%s1294_s5] ss:$0 sm:$0xff] }
 0x11f   :  { %v1264_v52 = vpop.f32.mrf.mxu0 }
 0x120   :  { %946 = vmatprep.mubr.bf16.mxu1 %v301_v51  ;;  %v270_v54 = vsel %vm269_vm0, %v263_v48, %v265_v49  ;;  %v272_v55 = vsel %vm269_vm0, %v265_v49, %v263_v48  ;;  %v261_v59 = vmax.f32 %v257_v50, 0.0  ;;  %v279_v62 = vsel %vm278_vm1, %v274_v58, %v276_v53 }
 0x121   :  { %v243_v56 = vpop.f32.mrf.mxu0  ;;  %v283_v57 = vpack.c.bf16 %v270_v54, %v272_v55  ;;  %v281_v63 = vsel %vm278_vm1, %v276_v53, %v274_v58 }
 0x122   :  { %v258_v60 = vadd.f32 %v836_v36, %v243_v56  ;;  %v264_v0 = vrot.slane %v261_v59, 7  ;;  %v514_v4 = vpack.c.bf16 %v281_v63, %v279_v62  ;;  %v275_v15 = vrot.slane %v261_v59, 1 }
 0x123   :  { %966 = vmatprep.mubr.bf16.mxu0 %v283_v57  ;;  %v245_v28 = vpop.f32.mrf.mxu0 }
 0x124   :  { %v262_v61 = vmax.f32 %v258_v60, 0.0 }
 0x126   :  { %v266_v1 = vrot.slane %v262_v61, 7  ;;  %v302_v2 = vpack.c.bf16 %v262_v61, %v261_v59  ;;  %v277_v14 = vrot.slane %v262_v61, 1 }
 0x128   :  { %947 = vmatmul.mubr.bf16.vlgmr.msra.gmra.mxu1 %v302_v2  ;;  %v271_v5 = vsel %vm269_vm0, %v264_v0, %v266_v1  ;;  %v273_v6 = vsel %vm269_vm0, %v266_v1, %v264_v0  ;;  %v280_v16 = vsel %vm278_vm1, %v275_v15, %v277_v14  ;;  %v282_v17 = vsel %vm278_vm1, %v277_v14, %v275_v15  ;;  %v870_v0 = vld [vmem:[%s1295_s6] ss:$0 sm:$0xff]  ;;  %s1158_s6 = scalar_lea.vmem %s805_s26, 256 }
 0x129   :  { %971 = vmatpush3.bf16.msra.mxu1 %v1062_v35  ;;  %986 = vmatprep.mubr.bf16.mxu1 %v514_v4  ;;  %v284_v7 = vpack.c.bf16 %v271_v5, %v273_v6  ;;  %v515_v18 = vpack.c.bf16 %v282_v17, %v280_v16  ;;  %p1159_p6 = scmp.ne.s32.totalorder %s805_s26, %s1158_s6  ;;  %p1164_p8 = scmp.lt.s32.totalorder %s1158_s6, %s1158_s6 }
 0x12a   :  { %972 = vmatprep.subr.bf16.mxu1 %v1063_v3 }
 0x12b   :  { %967 = vmatmul.mubr.bf16.vlgmr.msra.gmra.mxu0 %v284_v7  ;;  %p1165_p9 = por %p1164_p8, %p1163_p7 }
 0x12c   :  { %991 = vmatpush3.bf16.msra.mxu0 %v1070_v19 }
 0x12d   :  { %973 = vmatpush3.bf16.msra.mxu1 %v1063_v3  ;;  %992 = vmatprep.subr.bf16.mxu0 %v1071_v20  ;;  %p1166_p10 = pnand %p1165_p9, %p1159_p6 }
 0x12e   :  { %974 = vmatprep.subr.bf16.mxu1 %v1064_v8 }
 0x130   :  { %993 = vmatpush3.bf16.msra.mxu0 %v1071_v20 }
 0x131   :  { %975 = vmatpush3.bf16.msra.mxu1 %v1064_v8  ;;  %994 = vmatprep.subr.bf16.mxu0 %v1072_v21 }
 0x132   :  { %976 = vmatprep.subr.bf16.mxu1 %v1065_v9 }
 0x134   :  { %995 = vmatpush3.bf16.msra.mxu0 %v1072_v21 }
 0x135   :  { %977 = vmatpush3.bf16.msra.mxu1 %v1065_v9  ;;  %996 = vmatprep.subr.bf16.mxu0 %v1073_v22 }
 0x136   :  { %978 = vmatprep.subr.bf16.mxu1 %v1066_v10 }
 0x138   :  { %997 = vmatpush3.bf16.msra.mxu0 %v1073_v22 }
 0x139   :  { %979 = vmatpush3.bf16.msra.mxu1 %v1066_v10  ;;  %998 = vmatprep.subr.bf16.mxu0 %v1074_v23 }
 0x13a   :  { %980 = vmatprep.subr.bf16.mxu1 %v1067_v11 }
 0x13c   :  { %999 = vmatpush3.bf16.msra.mxu0 %v1074_v23 }
 0x13d   :  { %981 = vmatpush3.bf16.msra.mxu1 %v1067_v11  ;;  %1000 = vmatprep.subr.bf16.mxu0 %v1075_v24 }
 0x13e   :  { %982 = vmatprep.subr.bf16.mxu1 %v1068_v12 }
 0x140   :  { %1001 = vmatpush3.bf16.msra.mxu0 %v1075_v24 }
 0x141   :  { %983 = vmatpush3.bf16.msra.mxu1 %v1068_v12  ;;  %1002 = vmatprep.subr.bf16.mxu0 %v1076_v25 }
 0x142   :  { %984 = vmatprep.subr.bf16.mxu1 %v1069_v13 }
 0x144   :  { %1003 = vmatpush3.bf16.msra.mxu0 %v1076_v25 }
 0x145   :  { %985 = vmatpush3.bf16.msra.mxu1 %v1069_v13  ;;  %1004 = vmatprep.subr.bf16.mxu0 %v1077_v26 }
 0x148   :  { %987 = vmatmul.mubr.bf16.vlgmr.msra.gmra.mxu1 %v515_v18  ;;  %1005 = vmatpush3.bf16.msra.mxu0 %v1077_v26 }
 0x1e8   :  { %v948_v27 = vpop.f32.mrf.mxu1 }
 0x1ea   :  { %v402_v29 = vpop.f32.mrf.mxu1 }
 0x1eb   :  { %v968_v30 = vpop.f32.mrf.mxu0 }
 0x1ec   :  { %v949_v31 = vpop.f32.mrf.mxu1  ;;  %v508_v37 = vadd.f32 %v968_v30, %v948_v27 }
 0x1ed   :  { %v499_v32 = vpop.f32.mrf.mxu0 }
 0x1ee   :  { %v405_v33 = vpop.f32.mrf.mxu1  ;;  %v500_v36 = vadd.f32 %v499_v32, %v402_v29 }
 0x1ef   :  { %v969_v34 = vpop.f32.mrf.mxu0 }
 0x1f0   :  { %v511_v41 = vadd.f32 %v969_v34, %v949_v31 }
 0x1f1   :  { %v502_v38 = vpop.f32.mrf.mxu0 }
 0x1f2   :  { %v503_v46 = vadd.f32 %v502_v38, %v405_v33 }
 0x208   :  { %v988_v35 = vpop.f32.mrf.mxu1 }
 0x209   :  { %v632_v43 = vadd.f32 %v988_v35, %v508_v37 }
 0x20a   :  { %v615_v39 = vpop.f32.mrf.mxu1 }
 0x20b   :  { %v630_v42 = vadd.f32 %v615_v39, %v500_v36  ;;  %v643_v54 = vadd.f32 %v861_v47, %v632_v43 }
 0x20c   :  { %v989_v44 = vpop.f32.mrf.mxu1 }
 0x20d   :  { %v633_v48 = vadd.f32 %v989_v44, %v511_v41  ;;  %v641_v50 = vadd.f32 %v861_v47, %v630_v42  ;;  %v647_v59 = vmax.f32 %v643_v54, 0.0 }
 0x20e   :  { %v618_v49 = vpop.f32.mrf.mxu1 }
 0x20f   :  { %v644_v51 = vadd.f32 %v861_v47, %v633_v48  ;;  %v631_v53 = vadd.f32 %v618_v49, %v503_v46  ;;  %v645_v57 = vmax.f32 %v641_v50, 0.0 }
 0x211   :  { %v642_v55 = vadd.f32 %v861_v47, %v631_v53  ;;  %v648_v56 = vmax.f32 %v644_v51, 0.0 }
 0x213   :  { %v646_v58 = vmax.f32 %v642_v55, 0.0  ;;  %v650_v61 = vpack.c.bf16 %v648_v56, %v647_v59 }
 0x215   :  { %v649_v60 = vpack.c.bf16 %v646_v58, %v645_v57 }
 0x217   :  { %1006 = vmatprep.mubr.bf16.mxu0 %v649_v60 }
 0x218   :  { %1007 = vmatmul.mubr.bf16.vlgmr.msra.gmra.mxu0 %v650_v61 }
 0x2d8   :  { %v1008_v62 = vpop.f32.mrf.mxu0 }
 0x2d9   :  { %v758_v63 = vadd.f32 %v1008_v62, %v1264_v52 }
 0x2da   :  { %v749_v1 = vpop.f32.mrf.mxu0 }
 0x2db   :  { %v750_v2 = vadd.f32 %v749_v1, %v1260_v40  ;;  %v773_v4 = vadd.f32 %v870_v0, %v758_v63 }
 0x2dc   :  { %v1009_v3 = vpop.f32.mrf.mxu0 }
 0x2dd   :  { %v761_v5 = vadd.f32 %v1009_v3, %v245_v28  ;;  %v771_v7 = vadd.f32 %v870_v0, %v750_v2  ;;  %v777_v10 = vmax.f32 %v773_v4, 0.0 }
 0x2de   :  { %v752_v6 = vpop.f32.mrf.mxu0 }
 0x2df   :  { %v774_v8 = vadd.f32 %v870_v0, %v761_v5  ;;  %v753_v9 = vadd.f32 %v752_v6, %v1262_v45  ;;  %v775_v52 = vmax.f32 %v771_v7, 0.0 }
 0x2e1   :  { %v778_v11 = vmax.f32 %v774_v8, 0.0  ;;  %v772_v12 = vadd.f32 %v870_v0, %v753_v9 }
 0x2e3   :  { %v887_v13 = vpack.c.bf16 %v778_v11, %v777_v10  ;;  %v776_v14 = vmax.f32 %v772_v12, 0.0 }
 0x2e5   :  { %889 = vst [vmem:[#allocation10 + $0x8] sm:$0xff] %v887_v13   ;;  %v882_v15 = vpack.c.bf16 %v776_v14, %v775_v52 }
 0x2e7   :  { %883 = vst [vmem:[#allocation10] sm:$0xff] %v882_v15  }
 0x2e8   :  { %1169 = shalt.err (!%p1166_p10)
}
 0x2e9   :  { %810 = dma.vmem_to_hbm [thread:$0]  %s805_s26, 256, %s1296_s7, [#allocation4], %s1190_s11, %s1190_s11, %s1191_s12  }
 0x2ea   :  { %1184 = dma.done.wait [#allocation4], 256  }
 0x2eb   :  { %1185 = vsyncadd [#allocation4], 4294967040 }
 0x2ec   :  { %814 = vsyncpa [#allocation3], 1 }
 0x2ed   :  { %815 = vsyncpa [#allocation6], 1 }
 0x2ee   :  { %816 = vsyncpa [#allocation9], 1 }
 0x2ef   :  { %817 = vsyncpa [#allocation4], 1 }

// kernel: tpu_custom_call.1
= control target key start
LH: loop header
LB: loop body
LE: loop exit
PB: predicated region body
PF: predicated region fallthrough
CT: control target
= control target key end

     0   :  { %12 = vsyncpa [#allocation3], 0  ;;  %s1303_s0 = inlined_call_operand.hbm [shape: bf16[32,128], index: 0, kind: input, shape index: {}]   ;;  %s1304_s1 = inlined_call_operand.hbm [shape: bf16[128,256], index: 1, kind: input, shape index: {}]   ;;  %s1305_s2 = inlined_call_operand.hbm [shape: bf16[3,128,128], index: 2, kind: input, shape index: {}]   ;;  %s1306_s3 = inlined_call_operand.hbm [shape: bf16[128,128], index: 3, kind: input, shape index: {}]   ;;  %s1307_s4 = inlined_call_operand.vmem [shape: f32[1,128], index: 4, kind: input, shape index: {}]   ;;  %s1308_s5 = inlined_call_operand.vmem [shape: f32[1,128], index: 5, kind: input, shape index: {}]   ;;  %s1309_s6 = inlined_call_operand.vmem [shape: f32[1,128], index: 6, kind: input, shape index: {}]   ;;  %s1310_s7 = inlined_call_operand.hbm [shape: bf16[32,128], index: 7, kind: output, shape index: {}]  }
   0x1   :  { %13 = vsyncpa [#allocation6], 0 }
   0x2   :  { %14 = vsyncpa [#allocation9], 0 }
   0x3   :  { %15 = vsyncpa [#allocation4], 0  ;;  %s1200_s24 = smov [#allocation5]  }
   0x4   :  { %s33_s25 = sshll.u32 %s1200_s24, 4  ;;  %s34_s25 = int_to_ptr.vmem [resolvable:$true] %s33_s25 }
   0x5   :  { %s1100_s26 = scalar_lea.vmem %s34_s25, 2048  ;;  %p1105_p1 = scmp.lt.s32.totalorder %s34_s25, %s34_s25 }
   0x6   :  { %p1101_p0 = scmp.ne.s32.totalorder %s34_s25, %s1100_s26  ;;  %p1106_p2 = scmp.lt.s32.totalorder %s1100_s26, %s1100_s26 }
   0x8   :  { %p1107_p3 = por %p1106_p2, %p1105_p1 }
   0xa   :  { %p1108_p4 = pnand %p1107_p3, %p1101_p0 }
   0xc   :  { %1111 = shalt.err (!%p1108_p4)
}
   0xd   :  { %s1201_s27 = smov 128   ;;  %s1202_s28 = smov 8  }
   0xe   :  { %39 = dma.hbm_to_vmem [thread:$0]  %s1304_s1, 2048, %s34_s25, [#allocation6], %s1201_s27, %s1201_s27, %s1202_s28  }
   0xf   :  { %s1203_s8 = smov [#allocation2]  }
  0x10   :  { %s21_s9 = sshll.u32 %s1203_s8, 4  ;;  %s22_s9 = int_to_ptr.vmem [resolvable:$true] %s21_s9 }
  0x11   :  { %s1120_s10 = scalar_lea.vmem %s22_s9, 256  ;;  %p1125_p6 = scmp.lt.s32.totalorder %s22_s9, %s22_s9 }
  0x12   :  { %p1121_p5 = scmp.ne.s32.totalorder %s22_s9, %s1120_s10  ;;  %p1126_p7 = scmp.lt.s32.totalorder %s1120_s10, %s1120_s10 }
  0x14   :  { %p1127_p8 = por %p1126_p7, %p1125_p6 }
  0x16   :  { %p1128_p9 = pnand %p1127_p8, %p1121_p5 }
  0x18   :  { %1131 = shalt.err (!%p1128_p9)
}
  0x19   :  { %s1204_s11 = smov 64   ;;  %s1205_s12 = smov 4  }
  0x1a   :  { %27 = dma.hbm_to_vmem [thread:$0]  %s1303_s0, 256, %s22_s9, [#allocation3], %s1204_s11, %s1204_s11, %s1205_s12  }
  0x1b   :  { %s1206_s1 = smov [#allocation7]   ;;  %s1207_s16 = smov [#allocation8]  }
  0x1c   :  { %s45_s15 = sshll.u32 %s1206_s1, 4  ;;  %s57_s17 = sshll.u32 %s1207_s16, 4  ;;  %s46_s15 = int_to_ptr.vmem [resolvable:$true] %s45_s15  ;;  %s58_s17 = int_to_ptr.vmem [resolvable:$true] %s57_s17 }
  0x1d   :  { %s1140_s18 = scalar_lea.vmem %s46_s15, 3072  ;;  %p1145_p11 = scmp.lt.s32.totalorder %s46_s15, %s46_s15 }
  0x1e   :  { %p1141_p10 = scmp.ne.s32.totalorder %s46_s15, %s1140_s18  ;;  %p1146_p12 = scmp.lt.s32.totalorder %s1140_s18, %s1140_s18 }
  0x20   :  { %p1147_p13 = por %p1146_p12, %p1145_p11 }
  0x22   :  { %p1148_p0 = pnand %p1147_p13, %p1141_p10 }
  0x24   :  { %1151 = shalt.err (!%p1148_p0)
}
  0x25   :  { %51 = dma.hbm_to_vmem [thread:$0]  %s1305_s2, 3072, %s46_s15, [#allocation6], %s1204_s11, %s1204_s11, %s1205_s12  }
  0x26   :  { %s1160_s0 = scalar_lea.vmem %s58_s17, 1024  ;;  %p1165_p2 = scmp.lt.s32.totalorder %s58_s17, %s58_s17 }
  0x27   :  { %p1161_p1 = scmp.ne.s32.totalorder %s58_s17, %s1160_s0  ;;  %p1166_p3 = scmp.lt.s32.totalorder %s1160_s0, %s1160_s0 }
  0x29   :  { %p1167_p4 = por %p1166_p3, %p1165_p2 }
  0x2b   :  { %p1168_p5 = pnand %p1167_p4, %p1161_p1 }
  0x2d   :  { %1171 = shalt.err (!%p1168_p5)
}
  0x2e   :  { %63 = dma.hbm_to_vmem [thread:$0]  %s1306_s3, 1024, %s58_s17, [#allocation9], %s1204_s11, %s1204_s11, %s1205_s12  }
  0x2f   :  { %1192 = dma.done.wait [#allocation3], 256  }
  0x30   :  { %1193 = vsyncadd [#allocation3], 4294967040 }
  0x31   :  { %1194 = dma.done.wait [#allocation6], 5120  }
  0x32   :  { %1195 = vsyncadd [#allocation6], 4294962176 }
  0x33   :  { %1196 = dma.done.wait [#allocation9], 1024  }
  0x34   :  { %1197 = vsyncadd [#allocation9], 4294966272  ;;  %v1208_v0 = vmov 0   ;;  %v1034_v1 = vld [vmem:[#allocation5 + $0x74] ss:$8 sps:$4 sm:$0xff]   ;;  %v1063_v15 = vld [vmem:[#allocation7 + $0x68] sm:$0xff]  }
  0x35   :  { %227 = vmatprep.mubr.bf16.mxu0 %v1208_v0  ;;  %v1036_v2 = vld [vmem:[#allocation5 + $0x70] ss:$8 sps:$4 sm:$0xff]   ;;  %195 = vmatprep.subr.bf16.mxu0 %v1034_v1  ;;  %v1037_v3 = vld [vmem:[#allocation5 + $0x64] ss:$8 sps:$4 sm:$0xff]   ;;  %v1039_v4 = vld [vmem:[#allocation5 + $0x60] ss:$8 sps:$4 sm:$0xff]  }
  0x36   :  { %196 = vmatpush1.bf16.msra.mxu0 %v1036_v2  ;;  %v1040_v5 = vld [vmem:[#allocation5 + $0x54] ss:$8 sps:$4 sm:$0xff]   ;;  %v1042_v6 = vld [vmem:[#allocation5 + $0x50] ss:$8 sps:$4 sm:$0xff]   ;;  %v1043_v7 = vld [vmem:[#allocation5 + $0x44] ss:$8 sps:$4 sm:$0xff]  }
  0x37   :  { %197 = vmatprep.subr.bf16.mxu0 %v1037_v3  ;;  %v1045_v8 = vld [vmem:[#allocation5 + $0x40] ss:$8 sps:$4 sm:$0xff]   ;;  %v1046_v9 = vld [vmem:[#allocation5 + $0x34] ss:$8 sps:$4 sm:$0xff]   ;;  %v1048_v12 = vld [vmem:[#allocation5 + $0x30] ss:$8 sps:$4 sm:$0xff]  }
  0x38   :  { %v1060_v10 = vld [vmem:[#allocation7 + $0x78] sm:$0xff]   ;;  %v1061_v11 = vld [vmem:[#allocation7 + $0x70] sm:$0xff]   ;;  %v1049_v13 = vld [vmem:[#allocation5 + $0x24] ss:$8 sps:$4 sm:$0xff]   ;;  %vm271_vm0 = vcmask 1040384   ;;  %vm282_vm1 = vcmask 1046528  }
  0x39   :  { %944 = vmatprep.subr.bf16.mxu1 %v1060_v10  ;;  %v1051_v14 = vld [vmem:[#allocation5 + $0x20] ss:$8 sps:$4 sm:$0xff]   ;;  %v1052_v16 = vld [vmem:[#allocation5 + $0x14] ss:$8 sps:$4 sm:$0xff]   ;;  %v1054_v18 = vld [vmem:[#allocation5 + $0x10] ss:$8 sps:$4 sm:$0xff]  }
  0x3a   :  { %198 = vmatpush1.bf16.msra.mxu0 %v1039_v4  ;;  %945 = vmatpush3.bf16.msra.mxu1 %v1060_v10  ;;  %v1065_v17 = vld [vmem:[#allocation7 + $0x60] sm:$0xff]   ;;  %v1062_v21 = vld [vmem:[#allocation7 + $0x38] sm:$0xff]   ;;  %v1058_v22 = vld [vmem:[#allocation2] sm:$0xff]   ;;  %s1209_s25 = smov [#allocation10]  }
  0x3b   :  { %199 = vmatprep.subr.bf16.mxu0 %v1040_v5  ;;  %946 = vmatprep.subr.bf16.mxu1 %v1061_v11  ;;  %v1055_v19 = vld [vmem:[#allocation5 + $0x4] ss:$8 sps:$4 sm:$0xff]   ;;  %v1057_v20 = vld [vmem:[#allocation5] ss:$8 sps:$4 sm:$0xff]   ;;  %v1064_v23 = vld [vmem:[#allocation7 + $0x30] sm:$0xff]   ;;  %s818_s26 = sshll.u32 %s1209_s25, 4  ;;  %s819_s26 = int_to_ptr.vmem [resolvable:$true] %s818_s26 }
  0x3c   :  { %v1066_v24 = vld [vmem:[#allocation7 + $0x28] sm:$0xff]   ;;  %v1059_v25 = vld [vmem:[#allocation2 + $0x8] sm:$0xff]   ;;  %v1068_v27 = vld [vmem:[#allocation7 + $0x20] sm:$0xff]   ;;  %p1177_p7 = scmp.lt.s32.totalorder %s819_s26, %s819_s26 }
  0x3d   :  { %v1067_v26 = vld [vmem:[#allocation7 + $0x58] sm:$0xff]   ;;  %v1069_v28 = vld [vmem:[#allocation7 + $0x50] sm:$0xff]   ;;  %v1071_v30 = vld [vmem:[#allocation7 + $0x48] sm:$0xff]  }
  0x3e   :  { %200 = vmatpush1.bf16.msra.mxu0 %v1042_v6  ;;  %947 = vmatpush3.bf16.msra.mxu1 %v1061_v11  ;;  %v1070_v29 = vld [vmem:[#allocation7 + $0x18] sm:$0xff]   ;;  %v1072_v31 = vld [vmem:[#allocation7 + $0x10] sm:$0xff]   ;;  %v1073_v32 = vld [vmem:[#allocation7 + $0x40] sm:$0xff]  }
  0x3f   :  { %201 = vmatprep.subr.bf16.mxu0 %v1043_v7  ;;  %948 = vmatprep.subr.bf16.mxu1 %v1063_v15  ;;  %v1074_v33 = vld [vmem:[#allocation7 + $0x8] sm:$0xff]   ;;  %v1075_v34 = vld [vmem:[#allocation7] sm:$0xff]   ;;  %v1076_v35 = vld [vmem:[#allocation7 + $0xb8] sm:$0xff]  }
  0x40   :  { %v850_v36 = vld [vmem:[%s1307_s4] ss:$0 sm:$0xff]  ;;  %v1078_v6 = vld [vmem:[#allocation7 + $0xa8] sm:$0xff]   ;;  %v1079_v7 = vld [vmem:[#allocation7 + $0xa0] sm:$0xff]  }
  0x41   :  { %v1077_v1 = vld [vmem:[#allocation7 + $0xb0] sm:$0xff]   ;;  %v1082_v10 = vld [vmem:[#allocation7 + $0x88] sm:$0xff]   ;;  %v1083_v11 = vld [vmem:[#allocation7 + $0x80] sm:$0xff]  }
  0x42   :  { %202 = vmatpush1.bf16.msra.mxu0 %v1045_v8  ;;  %949 = vmatpush3.bf16.msra.mxu1 %v1063_v15  ;;  %v1080_v8 = vld [vmem:[#allocation7 + $0x98] sm:$0xff]  }
  0x43   :  { %203 = vmatprep.subr.bf16.mxu0 %v1046_v9  ;;  %950 = vmatprep.subr.bf16.mxu1 %v1065_v17  ;;  %v1081_v9 = vld [vmem:[#allocation7 + $0x90] sm:$0xff]  }
  0x46   :  { %204 = vmatpush1.bf16.msra.mxu0 %v1048_v12  ;;  %951 = vmatpush3.bf16.msra.mxu1 %v1065_v17  ;;  %v1084_v17 = vld [vmem:[#allocation8 + $0x38] sm:$0xff]  }
  0x47   :  { %205 = vmatprep.subr.bf16.mxu0 %v1049_v13  ;;  %952 = vmatprep.subr.bf16.mxu1 %v1067_v26 }
  0x4a   :  { %206 = vmatpush1.bf16.msra.mxu0 %v1051_v14  ;;  %953 = vmatpush3.bf16.msra.mxu1 %v1067_v26 }
  0x4b   :  { %207 = vmatprep.subr.bf16.mxu0 %v1052_v16  ;;  %954 = vmatprep.subr.bf16.mxu1 %v1069_v28 }
  0x4e   :  { %208 = vmatpush1.bf16.msra.mxu0 %v1054_v18  ;;  %955 = vmatpush3.bf16.msra.mxu1 %v1069_v28  ;;  %v1085_v18 = vld [vmem:[#allocation8 + $0x30] sm:$0xff]  }
  0x4f   :  { %209 = vmatprep.subr.bf16.mxu0 %v1055_v19  ;;  %956 = vmatprep.subr.bf16.mxu1 %v1071_v30  ;;  %v1086_v19 = vld [vmem:[#allocation8 + $0x28] sm:$0xff]  }
  0x52   :  { %210 = vmatpush1.bf16.msra.mxu0 %v1057_v20  ;;  %957 = vmatpush3.bf16.msra.mxu1 %v1071_v30  ;;  %v1087_v20 = vld [vmem:[#allocation8 + $0x20] sm:$0xff]  }
  0x53   :  { %964 = vmatprep.subr.bf16.mxu0 %v1062_v21  ;;  %958 = vmatprep.subr.bf16.mxu1 %v1073_v32 }
  0x55   :  { %228 = vmatmul.mubr.bf16.vlgmr.msra.gmra.mxu0 %v1058_v22  ;;  %v1089_v22 = vld [vmem:[#allocation8 + $0x10] sm:$0xff]  }
  0x56   :  { %237 = vmatprep.mubr.bf16.mxu0 %v1208_v0  ;;  %965 = vmatpush3.bf16.msra.mxu0 %v1062_v21  ;;  %v1088_v21 = vld [vmem:[#allocation8 + $0x18] sm:$0xff]  }
  0x57   :  { %966 = vmatprep.subr.bf16.mxu0 %v1064_v23  ;;  %959 = vmatpush3.bf16.msra.mxu1 %v1073_v32 }
  0x58   :  { %984 = vmatprep.subr.bf16.mxu1 %v1076_v35 }
  0x5a   :  { %967 = vmatpush3.bf16.msra.mxu0 %v1064_v23  ;;  %v1090_v23 = vld [vmem:[#allocation8 + $0x8] sm:$0xff]  }
  0x5b   :  { %968 = vmatprep.subr.bf16.mxu0 %v1066_v24 }
  0x5d   :  { %238 = vmatmul.mubr.bf16.gmra.mxu0 %v1059_v25 }
  0x5e   :  { %969 = vmatpush3.bf16.msra.mxu0 %v1066_v24  ;;  %v1091_v24 = vld [vmem:[#allocation8] sm:$0xff]  }
  0x5f   :  { %970 = vmatprep.subr.bf16.mxu0 %v1068_v27 }
  0x62   :  { %971 = vmatpush3.bf16.msra.mxu0 %v1068_v27 }
  0x63   :  { %972 = vmatprep.subr.bf16.mxu0 %v1070_v29 }
  0x66   :  { %973 = vmatpush3.bf16.msra.mxu0 %v1070_v29 }
  0x67   :  { %974 = vmatprep.subr.bf16.mxu0 %v1072_v31 }
  0x6a   :  { %975 = vmatpush3.bf16.msra.mxu0 %v1072_v31 }
  0x6b   :  { %976 = vmatprep.subr.bf16.mxu0 %v1074_v33 }
  0x6e   :  { %977 = vmatpush3.bf16.msra.mxu0 %v1074_v33 }
  0x6f   :  { %978 = vmatprep.subr.bf16.mxu0 %v1075_v34 }
  0x72   :  { %979 = vmatpush3.bf16.msra.mxu0 %v1075_v34 }
  0x73   :  { %1004 = vmatprep.subr.bf16.mxu0 %v1084_v17 }
 0x115   :  { %v229_v37 = vpop.f32.mrf.mxu0 }
 0x116   :  { %v255_v38 = vadd.f32 %v850_v36, %v229_v37 }
 0x117   :  { %v1274_v39 = vpop.f32.mrf.mxu0 }
 0x118   :  { %v259_v41 = vmax.f32 %v255_v38, 0.0 }
 0x119   :  { %v233_v40 = vpop.f32.mrf.mxu0 }
 0x11a   :  { %v256_v42 = vadd.f32 %v850_v36, %v233_v40  ;;  %v272_v46 = vrot.slane %v259_v41, 7  ;;  %v283_v56 = vrot.slane %v259_v41, 1 }
 0x11b   :  { %v1276_v43 = vpop.f32.mrf.mxu0 }
 0x11c   :  { %v260_v44 = vmax.f32 %v256_v42, 0.0 }
 0x11d   :  { %v239_v45 = vpop.f32.mrf.mxu0 }
 0x11e   :  { %v265_v47 = vrot.slane %v260_v44, 7  ;;  %v257_v48 = vadd.f32 %v850_v36, %v239_v45  ;;  %v315_v49 = vpack.c.bf16 %v260_v44, %v259_v41  ;;  %v284_v51 = vrot.slane %v260_v44, 1  ;;  %v875_v45 = vld [vmem:[%s1308_s5] ss:$0 sm:$0xff] }
 0x11f   :  { %v1278_v50 = vpop.f32.mrf.mxu0 }
 0x120   :  { %960 = vmatprep.mubr.bf16.mxu1 %v315_v49  ;;  %v273_v52 = vsel %vm271_vm0, %v272_v46, %v265_v47  ;;  %v280_v53 = vsel %vm271_vm0, %v265_v47, %v272_v46  ;;  %v261_v57 = vmax.f32 %v257_v48, 0.0  ;;  %v285_v60 = vsel %vm282_vm1, %v283_v56, %v284_v51 }
 0x121   :  { %v243_v54 = vpop.f32.mrf.mxu0  ;;  %v297_v55 = vpack.c.bf16 %v273_v52, %v280_v53  ;;  %v295_v61 = vsel %vm282_vm1, %v284_v51, %v283_v56 }
 0x122   :  { %v258_v58 = vadd.f32 %v850_v36, %v243_v54  ;;  %v274_v62 = vrot.slane %v261_v57, 7  ;;  %v528_v2 = vpack.c.bf16 %v295_v61, %v285_v60  ;;  %v286_v13 = vrot.slane %v261_v57, 1 }
 0x123   :  { %980 = vmatprep.mubr.bf16.mxu0 %v297_v55  ;;  %v245_v26 = vpop.f32.mrf.mxu0 }
 0x124   :  { %v262_v59 = vmax.f32 %v258_v58, 0.0 }
 0x126   :  { %v266_v63 = vrot.slane %v262_v59, 7  ;;  %v316_v0 = vpack.c.bf16 %v262_v59, %v261_v57  ;;  %v287_v12 = vrot.slane %v262_v59, 1 }
 0x128   :  { %961 = vmatmul.mubr.bf16.vlgmr.msra.gmra.mxu1 %v316_v0  ;;  %v275_v3 = vsel %vm271_vm0, %v274_v62, %v266_v63  ;;  %v281_v4 = vsel %vm271_vm0, %v266_v63, %v274_v62  ;;  %v288_v14 = vsel %vm282_vm1, %v286_v13, %v287_v12  ;;  %v296_v15 = vsel %vm282_vm1, %v287_v12, %v286_v13  ;;  %v884_v62 = vld [vmem:[%s1309_s6] ss:$0 sm:$0xff]  ;;  %s1172_s6 = scalar_lea.vmem %s819_s26, 256 }
 0x129   :  { %985 = vmatpush3.bf16.msra.mxu1 %v1076_v35  ;;  %1000 = vmatprep.mubr.bf16.mxu1 %v528_v2  ;;  %v298_v5 = vpack.c.bf16 %v275_v3, %v281_v4  ;;  %v529_v16 = vpack.c.bf16 %v296_v15, %v288_v14  ;;  %p1173_p6 = scmp.ne.s32.totalorder %s819_s26, %s1172_s6  ;;  %p1178_p8 = scmp.lt.s32.totalorder %s1172_s6, %s1172_s6 }
 0x12a   :  { %986 = vmatprep.subr.bf16.mxu1 %v1077_v1 }
 0x12b   :  { %981 = vmatmul.mubr.bf16.vlgmr.msra.gmra.mxu0 %v298_v5  ;;  %p1179_p9 = por %p1178_p8, %p1177_p7 }
 0x12c   :  { %1005 = vmatpush3.bf16.msra.mxu0 %v1084_v17 }
 0x12d   :  { %987 = vmatpush3.bf16.msra.mxu1 %v1077_v1  ;;  %1006 = vmatprep.subr.bf16.mxu0 %v1085_v18  ;;  %p1180_p10 = pnand %p1179_p9, %p1173_p6 }
 0x12e   :  { %988 = vmatprep.subr.bf16.mxu1 %v1078_v6 }
 0x130   :  { %1007 = vmatpush3.bf16.msra.mxu0 %v1085_v18 }
 0x131   :  { %989 = vmatpush3.bf16.msra.mxu1 %v1078_v6  ;;  %1008 = vmatprep.subr.bf16.mxu0 %v1086_v19 }
 0x132   :  { %990 = vmatprep.subr.bf16.mxu1 %v1079_v7 }
 0x134   :  { %1009 = vmatpush3.bf16.msra.mxu0 %v1086_v19 }
 0x135   :  { %991 = vmatpush3.bf16.msra.mxu1 %v1079_v7  ;;  %1010 = vmatprep.subr.bf16.mxu0 %v1087_v20 }
 0x136   :  { %992 = vmatprep.subr.bf16.mxu1 %v1080_v8 }
 0x138   :  { %1011 = vmatpush3.bf16.msra.mxu0 %v1087_v20 }
 0x139   :  { %993 = vmatpush3.bf16.msra.mxu1 %v1080_v8  ;;  %1012 = vmatprep.subr.bf16.mxu0 %v1088_v21 }
 0x13a   :  { %994 = vmatprep.subr.bf16.mxu1 %v1081_v9 }
 0x13c   :  { %1013 = vmatpush3.bf16.msra.mxu0 %v1088_v21 }
 0x13d   :  { %995 = vmatpush3.bf16.msra.mxu1 %v1081_v9  ;;  %1014 = vmatprep.subr.bf16.mxu0 %v1089_v22 }
 0x13e   :  { %996 = vmatprep.subr.bf16.mxu1 %v1082_v10 }
 0x140   :  { %1015 = vmatpush3.bf16.msra.mxu0 %v1089_v22 }
 0x141   :  { %997 = vmatpush3.bf16.msra.mxu1 %v1082_v10  ;;  %1016 = vmatprep.subr.bf16.mxu0 %v1090_v23 }
 0x142   :  { %998 = vmatprep.subr.bf16.mxu1 %v1083_v11 }
 0x144   :  { %1017 = vmatpush3.bf16.msra.mxu0 %v1090_v23 }
 0x145   :  { %999 = vmatpush3.bf16.msra.mxu1 %v1083_v11  ;;  %1018 = vmatprep.subr.bf16.mxu0 %v1091_v24 }
 0x148   :  { %1001 = vmatmul.mubr.bf16.vlgmr.msra.gmra.mxu1 %v529_v16  ;;  %1019 = vmatpush3.bf16.msra.mxu0 %v1091_v24 }
 0x1e8   :  { %v962_v25 = vpop.f32.mrf.mxu1 }
 0x1ea   :  { %v416_v27 = vpop.f32.mrf.mxu1 }
 0x1eb   :  { %v982_v28 = vpop.f32.mrf.mxu0 }
 0x1ec   :  { %v963_v29 = vpop.f32.mrf.mxu1  ;;  %v522_v35 = vadd.f32 %v982_v28, %v962_v25 }
 0x1ed   :  { %v513_v30 = vpop.f32.mrf.mxu0 }
 0x1ee   :  { %v419_v31 = vpop.f32.mrf.mxu1  ;;  %v514_v34 = vadd.f32 %v513_v30, %v416_v27 }
 0x1ef   :  { %v983_v32 = vpop.f32.mrf.mxu0 }
 0x1f0   :  { %v525_v38 = vadd.f32 %v983_v32, %v963_v29 }
 0x1f1   :  { %v516_v36 = vpop.f32.mrf.mxu0 }
 0x1f2   :  { %v517_v44 = vadd.f32 %v516_v36, %v419_v31 }
 0x208   :  { %v1002_v33 = vpop.f32.mrf.mxu1 }
 0x209   :  { %v646_v41 = vadd.f32 %v1002_v33, %v522_v35 }
 0x20a   :  { %v629_v37 = vpop.f32.mrf.mxu1 }
 0x20b   :  { %v644_v40 = vadd.f32 %v629_v37, %v514_v34  ;;  %v657_v52 = vadd.f32 %v875_v45, %v646_v41 }
 0x20c   :  { %v1003_v42 = vpop.f32.mrf.mxu1 }
 0x20d   :  { %v647_v46 = vadd.f32 %v1003_v42, %v525_v38  ;;  %v655_v48 = vadd.f32 %v875_v45, %v644_v40  ;;  %v661_v57 = vmax.f32 %v657_v52, 0.0 }
 0x20e   :  { %v632_v47 = vpop.f32.mrf.mxu1 }
 0x20f   :  { %v658_v49 = vadd.f32 %v875_v45, %v647_v46  ;;  %v645_v51 = vadd.f32 %v632_v47, %v517_v44  ;;  %v659_v55 = vmax.f32 %v655_v48, 0.0 }
 0x211   :  { %v656_v53 = vadd.f32 %v875_v45, %v645_v51  ;;  %v662_v54 = vmax.f32 %v658_v49, 0.0 }
 0x213   :  { %v660_v56 = vmax.f32 %v656_v53, 0.0  ;;  %v664_v59 = vpack.c.bf16 %v662_v54, %v661_v57 }
 0x215   :  { %v663_v58 = vpack.c.bf16 %v660_v56, %v659_v55 }
 0x217   :  { %1020 = vmatprep.mubr.bf16.mxu0 %v663_v58 }
 0x218   :  { %1021 = vmatmul.mubr.bf16.vlgmr.msra.gmra.mxu0 %v664_v59 }
 0x2d8   :  { %v1022_v60 = vpop.f32.mrf.mxu0 }
 0x2d9   :  { %v772_v61 = vadd.f32 %v1022_v60, %v1278_v50 }
 0x2da   :  { %v763_v63 = vpop.f32.mrf.mxu0 }
 0x2db   :  { %v764_v0 = vadd.f32 %v763_v63, %v1274_v39  ;;  %v787_v2 = vadd.f32 %v884_v62, %v772_v61 }
 0x2dc   :  { %v1023_v1 = vpop.f32.mrf.mxu0 }
 0x2dd   :  { %v775_v3 = vadd.f32 %v1023_v1, %v245_v26  ;;  %v785_v5 = vadd.f32 %v884_v62, %v764_v0  ;;  %v791_v8 = vmax.f32 %v787_v2, 0.0 }
 0x2de   :  { %v766_v4 = vpop.f32.mrf.mxu0 }
 0x2df   :  { %v788_v6 = vadd.f32 %v884_v62, %v775_v3  ;;  %v767_v7 = vadd.f32 %v766_v4, %v1276_v43  ;;  %v789_v50 = vmax.f32 %v785_v5, 0.0 }
 0x2e1   :  { %v792_v9 = vmax.f32 %v788_v6, 0.0  ;;  %v786_v10 = vadd.f32 %v884_v62, %v767_v7 }
 0x2e3   :  { %v901_v11 = vpack.c.bf16 %v792_v9, %v791_v8  ;;  %v790_v12 = vmax.f32 %v786_v10, 0.0 }
 0x2e5   :  { %903 = vst [vmem:[#allocation10 + $0x8] sm:$0xff] %v901_v11   ;;  %v896_v13 = vpack.c.bf16 %v790_v12, %v789_v50 }
 0x2e7   :  { %897 = vst [vmem:[#allocation10] sm:$0xff] %v896_v13  }
 0x2e8   :  { %1183 = shalt.err (!%p1180_p10)
}
 0x2e9   :  { %824 = dma.vmem_to_hbm [thread:$0]  %s819_s26, 256, %s1310_s7, [#allocation4], %s1204_s11, %s1204_s11, %s1205_s12  }
 0x2ea   :  { %1198 = dma.done.wait [#allocation4], 256  }
 0x2eb   :  { %1199 = vsyncadd [#allocation4], 4294967040 }
 0x2ec   :  { %828 = vsyncpa [#allocation3], 1 }
 0x2ed   :  { %829 = vsyncpa [#allocation6], 1 }
 0x2ee   :  { %830 = vsyncpa [#allocation9], 1 }
 0x2ef   :  { %831 = vsyncpa [#allocation4], 1 }

// kernel: tpu_custom_call.1
= control target key start
LH: loop header
LB: loop body
LE: loop exit
PB: predicated region body
PF: predicated region fallthrough
CT: control target
= control target key end

     0   :  { %12 = vsyncpa [#allocation3], 0  ;;  %s1303_s0 = inlined_call_operand.hbm [shape: bf16[32,128], index: 0, kind: input, shape index: {}]   ;;  %s1304_s1 = inlined_call_operand.hbm [shape: bf16[128,256], index: 1, kind: input, shape index: {}]   ;;  %s1305_s2 = inlined_call_operand.hbm [shape: bf16[3,128,128], index: 2, kind: input, shape index: {}]   ;;  %s1306_s3 = inlined_call_operand.hbm [shape: bf16[128,128], index: 3, kind: input, shape index: {}]   ;;  %s1307_s4 = inlined_call_operand.vmem [shape: f32[1,128], index: 4, kind: input, shape index: {}]   ;;  %s1308_s5 = inlined_call_operand.vmem [shape: f32[1,128], index: 5, kind: input, shape index: {}]   ;;  %s1309_s6 = inlined_call_operand.vmem [shape: f32[1,128], index: 6, kind: input, shape index: {}]   ;;  %s1310_s7 = inlined_call_operand.hbm [shape: bf16[32,128], index: 7, kind: output, shape index: {}]  }
   0x1   :  { %13 = vsyncpa [#allocation6], 0 }
   0x2   :  { %14 = vsyncpa [#allocation9], 0 }
   0x3   :  { %15 = vsyncpa [#allocation4], 0  ;;  %s1200_s24 = smov [#allocation5]  }
   0x4   :  { %s33_s25 = sshll.u32 %s1200_s24, 4  ;;  %s34_s25 = int_to_ptr.vmem [resolvable:$true] %s33_s25 }
   0x5   :  { %s1100_s26 = scalar_lea.vmem %s34_s25, 2048  ;;  %p1105_p1 = scmp.lt.s32.totalorder %s34_s25, %s34_s25 }
   0x6   :  { %p1101_p0 = scmp.ne.s32.totalorder %s34_s25, %s1100_s26  ;;  %p1106_p2 = scmp.lt.s32.totalorder %s1100_s26, %s1100_s26 }
   0x8   :  { %p1107_p3 = por %p1106_p2, %p1105_p1 }
   0xa   :  { %p1108_p4 = pnand %p1107_p3, %p1101_p0 }
   0xc   :  { %1111 = shalt.err (!%p1108_p4)
}
   0xd   :  { %s1201_s27 = smov 128   ;;  %s1202_s28 = smov 8  }
   0xe   :  { %39 = dma.hbm_to_vmem [thread:$0]  %s1304_s1, 2048, %s34_s25, [#allocation6], %s1201_s27, %s1201_s27, %s1202_s28  }
   0xf   :  { %s1203_s8 = smov [#allocation2]  }
  0x10   :  { %s21_s9 = sshll.u32 %s1203_s8, 4  ;;  %s22_s9 = int_to_ptr.vmem [resolvable:$true] %s21_s9 }
  0x11   :  { %s1120_s10 = scalar_lea.vmem %s22_s9, 256  ;;  %p1125_p6 = scmp.lt.s32.totalorder %s22_s9, %s22_s9 }
  0x12   :  { %p1121_p5 = scmp.ne.s32.totalorder %s22_s9, %s1120_s10  ;;  %p1126_p7 = scmp.lt.s32.totalorder %s1120_s10, %s1120_s10 }
  0x14   :  { %p1127_p8 = por %p1126_p7, %p1125_p6 }
  0x16   :  { %p1128_p9 = pnand %p1127_p8, %p1121_p5 }
  0x18   :  { %1131 = shalt.err (!%p1128_p9)
}
  0x19   :  { %s1204_s11 = smov 64   ;;  %s1205_s12 = smov 4  }
  0x1a   :  { %27 = dma.hbm_to_vmem [thread:$0]  %s1303_s0, 256, %s22_s9, [#allocation3], %s1204_s11, %s1204_s11, %s1205_s12  }
  0x1b   :  { %s1206_s1 = smov [#allocation7]   ;;  %s1207_s16 = smov [#allocation8]  }
  0x1c   :  { %s45_s15 = sshll.u32 %s1206_s1, 4  ;;  %s57_s17 = sshll.u32 %s1207_s16, 4  ;;  %s46_s15 = int_to_ptr.vmem [resolvable:$true] %s45_s15  ;;  %s58_s17 = int_to_ptr.vmem [resolvable:$true] %s57_s17 }
  0x1d   :  { %s1140_s18 = scalar_lea.vmem %s46_s15, 3072  ;;  %p1145_p11 = scmp.lt.s32.totalorder %s46_s15, %s46_s15 }
  0x1e   :  { %p1141_p10 = scmp.ne.s32.totalorder %s46_s15, %s1140_s18  ;;  %p1146_p12 = scmp.lt.s32.totalorder %s1140_s18, %s1140_s18 }
  0x20   :  { %p1147_p13 = por %p1146_p12, %p1145_p11 }
  0x22   :  { %p1148_p0 = pnand %p1147_p13, %p1141_p10 }
  0x24   :  { %1151 = shalt.err (!%p1148_p0)
}
  0x25   :  { %51 = dma.hbm_to_vmem [thread:$0]  %s1305_s2, 3072, %s46_s15, [#allocation6], %s1204_s11, %s1204_s11, %s1205_s12  }
  0x26   :  { %s1160_s0 = scalar_lea.vmem %s58_s17, 1024  ;;  %p1165_p2 = scmp.lt.s32.totalorder %s58_s17, %s58_s17 }
  0x27   :  { %p1161_p1 = scmp.ne.s32.totalorder %s58_s17, %s1160_s0  ;;  %p1166_p3 = scmp.lt.s32.totalorder %s1160_s0, %s1160_s0 }
  0x29   :  { %p1167_p4 = por %p1166_p3, %p1165_p2 }
  0x2b   :  { %p1168_p5 = pnand %p1167_p4, %p1161_p1 }
  0x2d   :  { %1171 = shalt.err (!%p1168_p5)
}
  0x2e   :  { %63 = dma.hbm_to_vmem [thread:$0]  %s1306_s3, 1024, %s58_s17, [#allocation9], %s1204_s11, %s1204_s11, %s1205_s12  }
  0x2f   :  { %1192 = dma.done.wait [#allocation3], 256  }
  0x30   :  { %1193 = vsyncadd [#allocation3], 4294967040 }
  0x31   :  { %1194 = dma.done.wait [#allocation6], 5120  }
  0x32   :  { %1195 = vsyncadd [#allocation6], 4294962176 }
  0x33   :  { %1196 = dma.done.wait [#allocation9], 1024  }
  0x34   :  { %1197 = vsyncadd [#allocation9], 4294966272  ;;  %v1208_v0 = vmov 0   ;;  %v1034_v1 = vld [vmem:[#allocation5 + $0x74] ss:$8 sps:$4 sm:$0xff]   ;;  %v1063_v15 = vld [vmem:[#allocation7 + $0x68] sm:$0xff]  }
  0x35   :  { %227 = vmatprep.mubr.bf16.mxu0 %v1208_v0  ;;  %v1036_v2 = vld [vmem:[#allocation5 + $0x70] ss:$8 sps:$4 sm:$0xff]   ;;  %195 = vmatprep.subr.bf16.mxu0 %v1034_v1  ;;  %v1037_v3 = vld [vmem:[#allocation5 + $0x64] ss:$8 sps:$4 sm:$0xff]   ;;  %v1039_v4 = vld [vmem:[#allocation5 + $0x60] ss:$8 sps:$4 sm:$0xff]  }
  0x36   :  { %196 = vmatpush1.bf16.msra.mxu0 %v1036_v2  ;;  %v1040_v5 = vld [vmem:[#allocation5 + $0x54] ss:$8 sps:$4 sm:$0xff]   ;;  %v1042_v6 = vld [vmem:[#allocation5 + $0x50] ss:$8 sps:$4 sm:$0xff]   ;;  %v1043_v7 = vld [vmem:[#allocation5 + $0x44] ss:$8 sps:$4 sm:$0xff]  }
  0x37   :  { %197 = vmatprep.subr.bf16.mxu0 %v1037_v3  ;;  %v1045_v8 = vld [vmem:[#allocation5 + $0x40] ss:$8 sps:$4 sm:$0xff]   ;;  %v1046_v9 = vld [vmem:[#allocation5 + $0x34] ss:$8 sps:$4 sm:$0xff]   ;;  %v1048_v12 = vld [vmem:[#allocation5 + $0x30] ss:$8 sps:$4 sm:$0xff]  }
  0x38   :  { %v1060_v10 = vld [vmem:[#allocation7 + $0x78] sm:$0xff]   ;;  %v1061_v11 = vld [vmem:[#allocation7 + $0x70] sm:$0xff]   ;;  %v1049_v13 = vld [vmem:[#allocation5 + $0x24] ss:$8 sps:$4 sm:$0xff]   ;;  %vm271_vm0 = vcmask 1040384   ;;  %vm282_vm1 = vcmask 1046528  }
  0x39   :  { %944 = vmatprep.subr.bf16.mxu1 %v1060_v10  ;;  %v1051_v14 = vld [vmem:[#allocation5 + $0x20] ss:$8 sps:$4 sm:$0xff]   ;;  %v1052_v16 = vld [vmem:[#allocation5 + $0x14] ss:$8 sps:$4 sm:$0xff]   ;;  %v1054_v18 = vld [vmem:[#allocation5 + $0x10] ss:$8 sps:$4 sm:$0xff]  }
  0x3a   :  { %198 = vmatpush1.bf16.msra.mxu0 %v1039_v4  ;;  %945 = vmatpush3.bf16.msra.mxu1 %v1060_v10  ;;  %v1065_v17 = vld [vmem:[#allocation7 + $0x60] sm:$0xff]   ;;  %v1062_v21 = vld [vmem:[#allocation7 + $0x38] sm:$0xff]   ;;  %v1058_v22 = vld [vmem:[#allocation2] sm:$0xff]   ;;  %s1209_s25 = smov [#allocation10]  }
  0x3b   :  { %199 = vmatprep.subr.bf16.mxu0 %v1040_v5  ;;  %946 = vmatprep.subr.bf16.mxu1 %v1061_v11  ;;  %v1055_v19 = vld [vmem:[#allocation5 + $0x4] ss:$8 sps:$4 sm:$0xff]   ;;  %v1057_v20 = vld [vmem:[#allocation5] ss:$8 sps:$4 sm:$0xff]   ;;  %v1064_v23 = vld [vmem:[#allocation7 + $0x30] sm:$0xff]   ;;  %s818_s26 = sshll.u32 %s1209_s25, 4  ;;  %s819_s26 = int_to_ptr.vmem [resolvable:$true] %s818_s26 }
  0x3c   :  { %v1066_v24 = vld [vmem:[#allocation7 + $0x28] sm:$0xff]   ;;  %v1059_v25 = vld [vmem:[#allocation2 + $0x8] sm:$0xff]   ;;  %v1068_v27 = vld [vmem:[#allocation7 + $0x20] sm:$0xff]   ;;  %p1177_p7 = scmp.lt.s32.totalorder %s819_s26, %s819_s26 }
  0x3d   :  { %v1067_v26 = vld [vmem:[#allocation7 + $0x58] sm:$0xff]   ;;  %v1069_v28 = vld [vmem:[#allocation7 + $0x50] sm:$0xff]   ;;  %v1071_v30 = vld [vmem:[#allocation7 + $0x48] sm:$0xff]  }
  0x3e   :  { %200 = vmatpush1.bf16.msra.mxu0 %v1042_v6  ;;  %947 = vmatpush3.bf16.msra.mxu1 %v1061_v11  ;;  %v1070_v29 = vld [vmem:[#allocation7 + $0x18] sm:$0xff]   ;;  %v1072_v31 = vld [vmem:[#allocation7 + $0x10] sm:$0xff]   ;;  %v1073_v32 = vld [vmem:[#allocation7 + $0x40] sm:$0xff]  }
  0x3f   :  { %201 = vmatprep.subr.bf16.mxu0 %v1043_v7  ;;  %948 = vmatprep.subr.bf16.mxu1 %v1063_v15  ;;  %v1074_v33 = vld [vmem:[#allocation7 + $0x8] sm:$0xff]   ;;  %v1075_v34 = vld [vmem:[#allocation7] sm:$0xff]   ;;  %v1076_v35 = vld [vmem:[#allocation7 + $0xb8] sm:$0xff]  }
  0x40   :  { %v850_v36 = vld [vmem:[%s1307_s4] ss:$0 sm:$0xff]  ;;  %v1078_v6 = vld [vmem:[#allocation7 + $0xa8] sm:$0xff]   ;;  %v1079_v7 = vld [vmem:[#allocation7 + $0xa0] sm:$0xff]  }
  0x41   :  { %v1077_v1 = vld [vmem:[#allocation7 + $0xb0] sm:$0xff]   ;;  %v1082_v10 = vld [vmem:[#allocation7 + $0x88] sm:$0xff]   ;;  %v1083_v11 = vld [vmem:[#allocation7 + $0x80] sm:$0xff]  }
  0x42   :  { %202 = vmatpush1.bf16.msra.mxu0 %v1045_v8  ;;  %949 = vmatpush3.bf16.msra.mxu1 %v1063_v15  ;;  %v1080_v8 = vld [vmem:[#allocation7 + $0x98] sm:$0xff]  }
  0x43   :  { %203 = vmatprep.subr.bf16.mxu0 %v1046_v9  ;;  %950 = vmatprep.subr.bf16.mxu1 %v1065_v17  ;;  %v1081_v9 = vld [vmem:[#allocation7 + $0x90] sm:$0xff]  }
  0x46   :  { %204 = vmatpush1.bf16.msra.mxu0 %v1048_v12  ;;  %951 = vmatpush3.bf16.msra.mxu1 %v1065_v17  ;;  %v1084_v17 = vld [vmem:[#allocation8 + $0x38] sm:$0xff]  }
  0x47   :  { %205 = vmatprep.subr.bf16.mxu0 %v1049_v13  ;;  %952 = vmatprep.subr.bf16.mxu1 %v1067_v26 }
  0x4a   :  { %206 = vmatpush1.bf16.msra.mxu0 %v1051_v14  ;;  %953 = vmatpush3.bf16.msra.mxu1 %v1067_v26 }
  0x4b   :  { %207 = vmatprep.subr.bf16.mxu0 %v1052_v16  ;;  %954 = vmatprep.subr.bf16.mxu1 %v1069_v28 }
  0x4e   :  { %208 = vmatpush1.bf16.msra.mxu0 %v1054_v18  ;;  %955 = vmatpush3.bf16.msra.mxu1 %v1069_v28  ;;  %v1085_v18 = vld [vmem:[#allocation8 + $0x30] sm:$0xff]  }
  0x4f   :  { %209 = vmatprep.subr.bf16.mxu0 %v1055_v19  ;;  %956 = vmatprep.subr.bf16.mxu1 %v1071_v30  ;;  %v1086_v19 = vld [vmem:[#allocation8 + $0x28] sm:$0xff]  }
  0x52   :  { %210 = vmatpush1.bf16.msra.mxu0 %v1057_v20  ;;  %957 = vmatpush3.bf16.msra.mxu1 %v1071_v30  ;;  %v1087_v20 = vld [vmem:[#allocation8 + $0x20] sm:$0xff]  }
  0x53   :  { %964 = vmatprep.subr.bf16.mxu0 %v1062_v21  ;;  %958 = vmatprep.subr.bf16.mxu1 %v1073_v32 }
  0x55   :  { %228 = vmatmul.mubr.bf16.vlgmr.msra.gmra.mxu0 %v1058_v22  ;;  %v1089_v22 = vld [vmem:[#allocation8 + $0x10] sm:$0xff]  }
  0x56   :  { %237 = vmatprep.mubr.bf16.mxu0 %v1208_v0  ;;  %965 = vmatpush3.bf16.msra.mxu0 %v1062_v21  ;;  %v1088_v21 = vld [vmem:[#allocation8 + $0x18] sm:$0xff]  }
  0x57   :  { %966 = vmatprep.subr.bf16.mxu0 %v1064_v23  ;;  %959 = vmatpush3.bf16.msra.mxu1 %v1073_v32 }
  0x58   :  { %984 = vmatprep.subr.bf16.mxu1 %v1076_v35 }
  0x5a   :  { %967 = vmatpush3.bf16.msra.mxu0 %v1064_v23  ;;  %v1090_v23 = vld [vmem:[#allocation8 + $0x8] sm:$0xff]  }
  0x5b   :  { %968 = vmatprep.subr.bf16.mxu0 %v1066_v24 }
  0x5d   :  { %238 = vmatmul.mubr.bf16.gmra.mxu0 %v1059_v25 }
  0x5e   :  { %969 = vmatpush3.bf16.msra.mxu0 %v1066_v24  ;;  %v1091_v24 = vld [vmem:[#allocation8] sm:$0xff]  }
  0x5f   :  { %970 = vmatprep.subr.bf16.mxu0 %v1068_v27 }
  0x62   :  { %971 = vmatpush3.bf16.msra.mxu0 %v1068_v27 }
  0x63   :  { %972 = vmatprep.subr.bf16.mxu0 %v1070_v29 }
  0x66   :  { %973 = vmatpush3.bf16.msra.mxu0 %v1070_v29 }
  0x67   :  { %974 = vmatprep.subr.bf16.mxu0 %v1072_v31 }
  0x6a   :  { %975 = vmatpush3.bf16.msra.mxu0 %v1072_v31 }
  0x6b   :  { %976 = vmatprep.subr.bf16.mxu0 %v1074_v33 }
  0x6e   :  { %977 = vmatpush3.bf16.msra.mxu0 %v1074_v33 }
  0x6f   :  { %978 = vmatprep.subr.bf16.mxu0 %v1075_v34 }
  0x72   :  { %979 = vmatpush3.bf16.msra.mxu0 %v1075_v34 }
  0x73   :  { %1004 = vmatprep.subr.bf16.mxu0 %v1084_v17 }
 0x115   :  { %v229_v37 = vpop.f32.mrf.mxu0 }
 0x116   :  { %v255_v38 = vadd.f32 %v850_v36, %v229_v37 }
 0x117   :  { %v1274_v39 = vpop.f32.mrf.mxu0 }
 0x118   :  { %v259_v41 = vmax.f32 %v255_v38, 0.0 }
 0x119   :  { %v233_v40 = vpop.f32.mrf.mxu0 }
 0x11a   :  { %v256_v42 = vadd.f32 %v850_v36, %v233_v40  ;;  %v272_v46 = vrot.slane %v259_v41, 7  ;;  %v283_v56 = vrot.slane %v259_v41, 1 }
 0x11b   :  { %v1276_v43 = vpop.f32.mrf.mxu0 }
 0x11c   :  { %v260_v44 = vmax.f32 %v256_v42, 0.0 }
 0x11d   :  { %v239_v45 = vpop.f32.mrf.mxu0 }
 0x11e   :  { %v265_v47 = vrot.slane %v260_v44, 7  ;;  %v257_v48 = vadd.f32 %v850_v36, %v239_v45  ;;  %v315_v49 = vpack.c.bf16 %v260_v44, %v259_v41  ;;  %v284_v51 = vrot.slane %v260_v44, 1  ;;  %v875_v45 = vld [vmem:[%s1308_s5] ss:$0 sm:$0xff] }
 0x11f   :  { %v1278_v50 = vpop.f32.mrf.mxu0 }
 0x120   :  { %960 = vmatprep.mubr.bf16.mxu1 %v315_v49  ;;  %v273_v52 = vsel %vm271_vm0, %v272_v46, %v265_v47  ;;  %v280_v53 = vsel %vm271_vm0, %v265_v47, %v272_v46  ;;  %v261_v57 = vmax.f32 %v257_v48, 0.0  ;;  %v285_v60 = vsel %vm282_vm1, %v283_v56, %v284_v51 }
 0x121   :  { %v243_v54 = vpop.f32.mrf.mxu0  ;;  %v297_v55 = vpack.c.bf16 %v273_v52, %v280_v53  ;;  %v295_v61 = vsel %vm282_vm1, %v284_v51, %v283_v56 }
 0x122   :  { %v258_v58 = vadd.f32 %v850_v36, %v243_v54  ;;  %v274_v62 = vrot.slane %v261_v57, 7  ;;  %v528_v2 = vpack.c.bf16 %v295_v61, %v285_v60  ;;  %v286_v13 = vrot.slane %v261_v57, 1 }
 0x123   :  { %980 = vmatprep.mubr.bf16.mxu0 %v297_v55  ;;  %v245_v26 = vpop.f32.mrf.mxu0 }
 0x124   :  { %v262_v59 = vmax.f32 %v258_v58, 0.0 }
 0x126   :  { %v266_v63 = vrot.slane %v262_v59, 7  ;;  %v316_v0 = vpack.c.bf16 %v262_v59, %v261_v57  ;;  %v287_v12 = vrot.slane %v262_v59, 1 }
 0x128   :  { %961 = vmatmul.mubr.bf16.vlgmr.msra.gmra.mxu1 %v316_v0  ;;  %v275_v3 = vsel %vm271_vm0, %v274_v62, %v266_v63  ;;  %v281_v4 = vsel %vm271_vm0, %v266_v63, %v274_v62  ;;  %v288_v14 = vsel %vm282_vm1, %v286_v13, %v287_v12  ;;  %v296_v15 = vsel %vm282_vm1, %v287_v12, %v286_v13  ;;  %v884_v62 = vld [vmem:[%s1309_s6] ss:$0 sm:$0xff]  ;;  %s1172_s6 = scalar_lea.vmem %s819_s26, 256 }
 0x129   :  { %985 = vmatpush3.bf16.msra.mxu1 %v1076_v35  ;;  %1000 = vmatprep.mubr.bf16.mxu1 %v528_v2  ;;  %v298_v5 = vpack.c.bf16 %v275_v3, %v281_v4  ;;  %v529_v16 = vpack.c.bf16 %v296_v15, %v288_v14  ;;  %p1173_p6 = scmp.ne.s32.totalorder %s819_s26, %s1172_s6  ;;  %p1178_p8 = scmp.lt.s32.totalorder %s1172_s6, %s1172_s6 }
 0x12a   :  { %986 = vmatprep.subr.bf16.mxu1 %v1077_v1 }
 0x12b   :  { %981 = vmatmul.mubr.bf16.vlgmr.msra.gmra.mxu0 %v298_v5  ;;  %p1179_p9 = por %p1178_p8, %p1177_p7 }
 0x12c   :  { %1005 = vmatpush3.bf16.msra.mxu0 %v1084_v17 }
 0x12d   :  { %987 = vmatpush3.bf16.msra.mxu1 %v1077_v1  ;;  %1006 = vmatprep.subr.bf16.mxu0 %v1085_v18  ;;  %p1180_p10 = pnand %p1179_p9, %p1173_p6 }
 0x12e   :  { %988 = vmatprep.subr.bf16.mxu1 %v1078_v6 }
 0x130   :  { %1007 = vmatpush3.bf16.msra.mxu0 %v1085_v18 }
 0x131   :  { %989 = vmatpush3.bf16.msra.mxu1 %v1078_v6  ;;  %1008 = vmatprep.subr.bf16.mxu0 %v1086_v19 }
 0x132   :  { %990 = vmatprep.subr.bf16.mxu1 %v1079_v7 }
 0x134   :  { %1009 = vmatpush3.bf16.msra.mxu0 %v1086_v19 }
 0x135   :  { %991 = vmatpush3.bf16.msra.mxu1 %v1079_v7  ;;  %1010 = vmatprep.subr.bf16.mxu0 %v1087_v20 }
 0x136   :  { %992 = vmatprep.subr.bf16.mxu1 %v1080_v8 }
 0x138   :  { %1011 = vmatpush3.bf16.msra.mxu0 %v1087_v20 }
 0x139   :  { %993 = vmatpush3.bf16.msra.mxu1 %v1080_v8  ;;  %1012 = vmatprep.subr.bf16.mxu0 %v1088_v21 }
 0x13a   :  { %994 = vmatprep.subr.bf16.mxu1 %v1081_v9 }
 0x13c   :  { %1013 = vmatpush3.bf16.msra.mxu0 %v1088_v21 }
 0x13d   :  { %995 = vmatpush3.bf16.msra.mxu1 %v1081_v9  ;;  %1014 = vmatprep.subr.bf16.mxu0 %v1089_v22 }
 0x13e   :  { %996 = vmatprep.subr.bf16.mxu1 %v1082_v10 }
 0x140   :  { %1015 = vmatpush3.bf16.msra.mxu0 %v1089_v22 }
 0x141   :  { %997 = vmatpush3.bf16.msra.mxu1 %v1082_v10  ;;  %1016 = vmatprep.subr.bf16.mxu0 %v1090_v23 }
 0x142   :  { %998 = vmatprep.subr.bf16.mxu1 %v1083_v11 }
 0x144   :  { %1017 = vmatpush3.bf16.msra.mxu0 %v1090_v23 }
 0x145   :  { %999 = vmatpush3.bf16.msra.mxu1 %v1083_v11  ;;  %1018 = vmatprep.subr.bf16.mxu0 %v1091_v24 }
 0x148   :  { %1001 = vmatmul.mubr.bf16.vlgmr.msra.gmra.mxu1 %v529_v16  ;;  %1019 = vmatpush3.bf16.msra.mxu0 %v1091_v24 }
 0x1e8   :  { %v962_v25 = vpop.f32.mrf.mxu1 }
 0x1ea   :  { %v416_v27 = vpop.f32.mrf.mxu1 }
 0x1eb   :  { %v982_v28 = vpop.f32.mrf.mxu0 }
 0x1ec   :  { %v963_v29 = vpop.f32.mrf.mxu1  ;;  %v522_v35 = vadd.f32 %v982_v28, %v962_v25 }
 0x1ed   :  { %v513_v30 = vpop.f32.mrf.mxu0 }
 0x1ee   :  { %v419_v31 = vpop.f32.mrf.mxu1  ;;  %v514_v34 = vadd.f32 %v513_v30, %v416_v27 }
 0x1ef   :  { %v983_v32 = vpop.f32.mrf.mxu0 }
 0x1f0   :  { %v525_v38 = vadd.f32 %v983_v32, %v963_v29 }
 0x1f1   :  { %v516_v36 = vpop.f32.mrf.mxu0 }
 0x1f2   :  { %v517_v44 = vadd.f32 %v516_v36, %v419_v31 }
 0x208   :  { %v1002_v33 = vpop.f32.mrf.mxu1 }
 0x209   :  { %v646_v41 = vadd.f32 %v1002_v33, %v522_v35 }
 0x20a   :  { %v629_v37 = vpop.f32.mrf.mxu1 }
 0x20b   :  { %v644_v40 = vadd.f32 %v629_v37, %v514_v34  ;;  %v657_v52 = vadd.f32 %v875_v45, %v646_v41 }
 0x20c   :  { %v1003_v42 = vpop.f32.mrf.mxu1 }
 0x20d   :  { %v647_v46 = vadd.f32 %v1003_v42, %v525_v38  ;;  %v655_v48 = vadd.f32 %v875_v45, %v644_v40  ;;  %v661_v57 = vmax.f32 %v657_v52, 0.0 }
 0x20e   :  { %v632_v47 = vpop.f32.mrf.mxu1 }
 0x20f   :  { %v658_v49 = vadd.f32 %v875_v45, %v647_v46  ;;  %v645_v51 = vadd.f32 %v632_v47, %v517_v44  ;;  %v659_v55 = vmax.f32 %v655_v48, 0.0 }
 0x211   :  { %v656_v53 = vadd.f32 %v875_v45, %v645_v51  ;;  %v662_v54 = vmax.f32 %v658_v49, 0.0 }
 0x213   :  { %v660_v56 = vmax.f32 %v656_v53, 0.0  ;;  %v664_v59 = vpack.c.bf16 %v662_v54, %v661_v57 }
 0x215   :  { %v663_v58 = vpack.c.bf16 %v660_v56, %v659_v55 }
 0x217   :  { %1020 = vmatprep.mubr.bf16.mxu0 %v663_v58 }
 0x218   :  { %1021 = vmatmul.mubr.bf16.vlgmr.msra.gmra.mxu0 %v664_v59 }
 0x2d8   :  { %v1022_v60 = vpop.f32.mrf.mxu0 }
 0x2d9   :  { %v772_v61 = vadd.f32 %v1022_v60, %v1278_v50 }
 0x2da   :  { %v763_v63 = vpop.f32.mrf.mxu0 }
 0x2db   :  { %v764_v0 = vadd.f32 %v763_v63, %v1274_v39  ;;  %v787_v2 = vadd.f32 %v884_v62, %v772_v61 }
 0x2dc   :  { %v1023_v1 = vpop.f32.mrf.mxu0 }
 0x2dd   :  { %v775_v3 = vadd.f32 %v1023_v1, %v245_v26  ;;  %v785_v5 = vadd.f32 %v884_v62, %v764_v0  ;;  %v791_v8 = vmax.f32 %v787_v2, 0.0 }
 0x2de   :  { %v766_v4 = vpop.f32.mrf.mxu0 }
 0x2df   :  { %v788_v6 = vadd.f32 %v884_v62, %v775_v3  ;;  %v767_v7 = vadd.f32 %v766_v4, %v1276_v43  ;;  %v789_v50 = vmax.f32 %v785_v5, 0.0 }
 0x2e1   :  { %v792_v9 = vmax.f32 %v788_v6, 0.0  ;;  %v786_v10 = vadd.f32 %v884_v62, %v767_v7 }
 0x2e3   :  { %v901_v11 = vpack.c.bf16 %v792_v9, %v791_v8  ;;  %v790_v12 = vmax.f32 %v786_v10, 0.0 }
 0x2e5   :  { %903 = vst [vmem:[#allocation10 + $0x8] sm:$0xff] %v901_v11   ;;  %v896_v13 = vpack.c.bf16 %v790_v12, %v789_v50 }
 0x2e7   :  { %897 = vst [vmem:[#allocation10] sm:$0xff] %v896_v13  }
 0x2e8   :  { %1183 = shalt.err (!%p1180_p10)
}
 0x2e9   :  { %824 = dma.vmem_to_hbm [thread:$0]  %s819_s26, 256, %s1310_s7, [#allocation4], %s1204_s11, %s1204_s11, %s1205_s12  }
 0x2ea   :  { %1198 = dma.done.wait [#allocation4], 256  }
 0x2eb   :  { %1199 = vsyncadd [#allocation4], 4294967040 }
 0x2ec   :  { %828 = vsyncpa [#allocation3], 1 }
 0x2ed   :  { %829 = vsyncpa [#allocation6], 1 }
 0x2ee   :  { %830 = vsyncpa [#allocation9], 1 }
 0x2ef   :  { %831 = vsyncpa [#allocation4], 1 }

</bundles_post_ra>
